<compile_context>
chip_gen: v6e
topology: v6e:2x2x1
jax: 0.10.0
libtpu: 0.0.40
codegen_flags: <defaults>
</compile_context>

<pallas_src>
import functools
import math

import jax
import jax.numpy as jnp
from jax import lax
from jax.experimental import pallas as pl
from jax.experimental.pallas import tpu as pltpu

NEG_BIG = -1e12                      # GlobalPointer mask sentinel
VMEM_LIMIT = 48 * 1024 * 1024        # explicit scoped-VMEM budget (safe on v5e/v6e/v7x)


# ----------------------------------------------------------------------------
# Fused ERENet kernel: embedding -> 1 transformer layer -> 3 GlobalPointer heads.
# ----------------------------------------------------------------------------
def _layer_norm(x, gamma_beta, eps=1e-12):
    # x: [L, H] f32, gamma_beta: [2, H] f32
    mean = jnp.mean(x, axis=-1, keepdims=True)
    var = jnp.mean((x - mean) ** 2, axis=-1, keepdims=True)
    xn = (x - mean) * lax.rsqrt(var + eps)
    return xn * gamma_beta[0:1, :] + gamma_beta[1:2, :]


def make_erenet_kernel(L, H, ent_heads, rel_heads, D):
    EM = ent_heads * 2 * D       # mention projection width (per copy)
    RM = rel_heads * 2 * D       # head/tail projection width
    inv_sqrt_h = 1.0 / math.sqrt(H)

    def kernel(emb_ref, mask_ref,
               wqkv_ref, bqkv_ref, wo_ref, bo_ref, ln1_ref,
               w1_ref, b1_ref, w2_ref, b2_ref, ln2_ref,
               gpw_ref, gpb_ref, cos_ref, sin_ref,
               mention_ref, head_ref, tail_ref):
        x_bf = emb_ref[0]                         # [L, H] bf16 (matmul operand)
        x = x_bf.astype(jnp.float32)              # f32 copy for LN / residuals
        m = mask_ref[0]                           # [1, L] f32 (1 = keep, 0 = pad)

        # ---------------- encoder: post-LN transformer layer -----------------
        # QKV projection (bf16 MXU, f32 accumulation).
        qkv = jnp.dot(x_bf, wqkv_ref[...],
                      preferred_element_type=jnp.float32) + bqkv_ref[...]
        q = qkv[:, :H].astype(jnp.bfloat16)
        k = qkv[:, H:2 * H].astype(jnp.bfloat16)
        v = qkv[:, 2 * H:].astype(jnp.bfloat16)

        # Attention scores + key-side padding mask; softmax in f32.
        scores = lax.dot_general(q, k, (((1,), (1,)), ((), ())),
                                 preferred_element_type=jnp.float32) * inv_sqrt_h
        scores = scores + (1.0 - m) * (-1e9)
        smax = jnp.max(scores, axis=-1, keepdims=True)
        p = jnp.exp(scores - smax)
        p = p * pl.reciprocal(jnp.sum(p, axis=-1, keepdims=True), approx=True)

        ctx = jnp.dot(p.astype(jnp.bfloat16), v,
                      preferred_element_type=jnp.float32)              # [L, H]
        attn = jnp.dot(ctx.astype(jnp.bfloat16), wo_ref[...],
                       preferred_element_type=jnp.float32) + bo_ref[...]

        x1 = _layer_norm(x + attn, ln1_ref[...])                       # f32

        h1 = jax.nn.gelu(
            jnp.dot(x1.astype(jnp.bfloat16), w1_ref[...],
                    preferred_element_type=jnp.float32) + b1_ref[...])
        ffn = jnp.dot(h1.astype(jnp.bfloat16), w2_ref[...],
                      preferred_element_type=jnp.float32) + b2_ref[...]

        hidden = _layer_norm(x1 + ffn, ln2_ref[...])                   # [L, H] f32
        hid_bf = hidden.astype(jnp.bfloat16)                           # stays in VMEM

        # ---------------- fused GlobalPointer heads ---------------------------
        # One wide projection for all heads of all three GlobalPointers
        # (columns: [mention | mention@rot | so_head | so_tail], q-cols pre-scaled
        # by 1/sqrt(D) on the host).
        proj = jnp.dot(hid_bf, gpw_ref[...],
                       preferred_element_type=jnp.float32) + gpb_ref[...]

        pm = proj[:, :EM]
        pm_rot = proj[:, EM:2 * EM]
        ph = proj[:, 2 * EM:2 * EM + RM]
        pt = proj[:, 2 * EM + RM:2 * EM + 2 * RM]

        # RoPE for the mention head: rotation folded into weights -> pure VPU work.
        pm = pm * cos_ref[...] + pm_rot * sin_ref[...]

        # Additive masks, built once per grid step.
        pad = jnp.transpose(m) * m                                  # [L, L]
        neg = (1.0 - pad) * NEG_BIG                                 # padding penalty
        row = lax.broadcasted_iota(jnp.int32, (L, L), 0)
        col = lax.broadcasted_iota(jnp.int32, (L, L), 1)
        mask_mention = neg + jnp.where(row > col, NEG_BIG, 0.0)     # + strict lower-tri
        mask_plain = neg

        def bilinear(p_all, h):
            qw = p_all[:, h * 2 * D:h * 2 * D + D]                  # [L, D]
            kw = p_all[:, h * 2 * D + D:(h + 1) * 2 * D]            # [L, D]
            return lax.dot_general(qw, kw, (((1,), (1,)), ((), ())),
                                   preferred_element_type=jnp.float32)

        for h in range(ent_heads):
            mention_ref[0, h, :, :] = bilinear(pm, h) + mask_mention
        for h in range(rel_heads):
            head_ref[0, h, :, :] = bilinear(ph, h) + mask_plain
            tail_ref[0, h, :, :] = bilinear(pt, h) + mask_plain

    return kernel


def erenet_fused_forward(emb, mask_f, prep, ent_heads, rel_heads, D):
    B, L, H = emb.shape
    F = prep["enc_w1"].shape[1]
    EM = ent_heads * 2 * D
    RM = rel_heads * 2 * D
    TOT = 2 * EM + 2 * RM
    full = lambda shape: pl.BlockSpec(shape, lambda b: (0,) * len(shape))
    return pl.pallas_call(
        make_erenet_kernel(L, H, ent_heads, rel_heads, D),
        out_shape=(
            jax.ShapeDtypeStruct((B, ent_heads, L, L), jnp.float32),
            jax.ShapeDtypeStruct((B, rel_heads, L, L), jnp.float32),
            jax.ShapeDtypeStruct((B, rel_heads, L, L), jnp.float32),
        ),
        grid=(B,),
        in_specs=[
            pl.BlockSpec((1, L, H), lambda b: (b, 0, 0)),      # emb
            pl.BlockSpec((1, 1, L), lambda b: (b, 0, 0)),      # mask
            full((H, 3 * H)),                                  # enc_wqkv
            full((1, 3 * H)),                                  # enc_bqkv
            full((H, H)),                                      # enc_wo
            full((1, H)),                                      # enc_bo
            full((2, H)),                                      # enc_ln1
            full((H, F)),                                      # enc_w1
            full((1, F)),                                      # enc_b1
            full((F, H)),                                      # enc_w2
            full((1, H)),                                      # enc_b2
            full((2, H)),                                      # enc_ln2
            full((H, TOT)),                                    # gp_w_all
            full((1, TOT)),                                    # gp_b_all
            full((L, EM)),                                     # gp_cos
            full((L, EM)),                                     # gp_sin
        ],
        out_specs=(
            pl.BlockSpec((1, ent_heads, L, L), lambda b: (b, 0, 0, 0)),
            pl.BlockSpec((1, rel_heads, L, L), lambda b: (b, 0, 0, 0)),
            pl.BlockSpec((1, rel_heads, L, L), lambda b: (b, 0, 0, 0)),
        ),
        compiler_params=pltpu.CompilerParams(
            dimension_semantics=("parallel",),
            vmem_limit_bytes=VMEM_LIMIT),
    )(emb, mask_f,
      prep["enc_wqkv"], prep["enc_bqkv"], prep["enc_wo"], prep["enc_bo"],
      prep["enc_ln1"], prep["enc_w1"], prep["enc_b1"], prep["enc_w2"],
      prep["enc_b2"], prep["enc_ln2"],
      prep["gp_w_all"], prep["gp_b_all"], prep["gp_cos"], prep["gp_sin"])


# ----------------------------------------------------------------------------
# Parameter construction + host-side weight preparation.
# ----------------------------------------------------------------------------
def build_params(key, vocab, type_vocab, L, H, ent_heads, rel_heads, D):
    F = 4 * H
    ks = jax.random.split(key, 16)
    n = lambda k, shape, s=0.02: (s * jax.random.normal(k, shape)).astype(jnp.float32)
    return {
        "tok_emb": n(ks[0], (vocab, H)),
        "type_emb": n(ks[1], (type_vocab, H)),
        "pos_emb": n(ks[2], (L, H)),
        "enc_wqkv": n(ks[3], (H, 3 * H)),
        "enc_bqkv": jnp.zeros((1, 3 * H), jnp.float32),
        "enc_wo": n(ks[4], (H, H)),
        "enc_bo": jnp.zeros((1, H), jnp.float32),
        "enc_ln1": jnp.stack([jnp.ones((H,)), jnp.zeros((H,))]).astype(jnp.float32),
        "enc_w1": n(ks[5], (H, F)),
        "enc_b1": jnp.zeros((1, F), jnp.float32),
        "enc_w2": n(ks[6], (F, H)),
        "enc_b2": jnp.zeros((1, H), jnp.float32),
        "enc_ln2": jnp.stack([jnp.ones((H,)), jnp.zeros((H,))]).astype(jnp.float32),
        "gp_mention_w": n(ks[7], (H, ent_heads * 2 * D)),
        "gp_mention_b": jnp.zeros((1, ent_heads * 2 * D), jnp.float32),
        "gp_head_w": n(ks[8], (H, rel_heads * 2 * D)),
        "gp_head_b": jnp.zeros((1, rel_heads * 2 * D), jnp.float32),
        "gp_tail_w": n(ks[9], (H, rel_heads * 2 * D)),
        "gp_tail_b": jnp.zeros((1, rel_heads * 2 * D), jnp.float32),
    }


def rope_tables(L, D):
    # GPLinker SinusoidalPositionEmbedding with repeat_interleave(2) split.
    pos = jnp.arange(L, dtype=jnp.float32)[:, None]                     # [L, 1]
    freq = jnp.power(10000.0, -2.0 * jnp.arange(D // 2, dtype=jnp.float32) / D)
    ang = pos * freq[None, :]                                           # [L, D/2]
    sin_pos = jnp.repeat(jnp.sin(ang), 2, axis=-1)                      # [L, D]
    cos_pos = jnp.repeat(jnp.cos(ang), 2, axis=-1)                      # [L, D]
    # rotation matrix: (x @ rot)[2i] = -x[2i+1], (x @ rot)[2i+1] = x[2i]
    rot = jnp.zeros((D, D), jnp.float32)
    idx = jnp.arange(D // 2)
    rot = rot.at[2 * idx + 1, 2 * idx].set(-1.0)
    rot = rot.at[2 * idx, 2 * idx + 1].set(1.0)
    return cos_pos, sin_pos, rot


def _scale_q_cols(w, b, heads, D, scale):
    # Fold 1/sqrt(D) into the q columns (per head: [q(D) | k(D)]).
    H = w.shape[0]
    w3 = w.reshape(H, heads, 2, D).at[:, :, 0, :].multiply(scale)
    b3 = b.reshape(1, heads, 2, D).at[:, :, 0, :].multiply(scale)
    return w3.reshape(H, heads * 2 * D), b3.reshape(1, heads * 2 * D)


def _rotate_cols(w, b, heads, D, rot):
    # Fold the RoPE rotation into the weights: (xW + b) @ rot == x(W@rot) + b@rot.
    H = w.shape[0]
    w_r = jnp.matmul(w.reshape(H, heads * 2, D), rot).reshape(H, heads * 2 * D)
    b_r = jnp.matmul(b.reshape(1, heads * 2, D), rot).reshape(1, heads * 2 * D)
    return w_r, b_r


def prepare_params(p, L, ent_heads, rel_heads, D):
    scale = 1.0 / math.sqrt(D)
    cos_pos, sin_pos, rot = rope_tables(L, D)

    wm, bm = _scale_q_cols(p["gp_mention_w"], p["gp_mention_b"], ent_heads, D, scale)
    wh, bh = _scale_q_cols(p["gp_head_w"], p["gp_head_b"], rel_heads, D, scale)
    wt, bt = _scale_q_cols(p["gp_tail_w"], p["gp_tail_b"], rel_heads, D, scale)
    wm_r, bm_r = _rotate_cols(wm, bm, ent_heads, D, rot)

    w_all = jnp.concatenate([wm, wm_r, wh, wt], axis=1).astype(jnp.bfloat16)
    b_all = jnp.concatenate([bm, bm_r, bh, bt], axis=1).astype(jnp.float32)

    cos_full = jnp.tile(cos_pos, (1, ent_heads * 2)).astype(jnp.float32)  # [L, EM]
    sin_full = jnp.tile(sin_pos, (1, ent_heads * 2)).astype(jnp.float32)  # [L, EM]

    return {
        "tok_emb": p["tok_emb"], "type_emb": p["type_emb"], "pos_emb": p["pos_emb"],
        "enc_wqkv": p["enc_wqkv"].astype(jnp.bfloat16), "enc_bqkv": p["enc_bqkv"],
        "enc_wo": p["enc_wo"].astype(jnp.bfloat16), "enc_bo": p["enc_bo"],
        "enc_ln1": p["enc_ln1"],
        "enc_w1": p["enc_w1"].astype(jnp.bfloat16), "enc_b1": p["enc_b1"],
        "enc_w2": p["enc_w2"].astype(jnp.bfloat16), "enc_b2": p["enc_b2"],
        "enc_ln2": p["enc_ln2"],
        "gp_w_all": w_all, "gp_b_all": b_all,
        "gp_cos": cos_full, "gp_sin": sin_full,
    }


# ----------------------------------------------------------------------------
# ERENet forward.
# ----------------------------------------------------------------------------
def erenet_forward(prep, token_ids, mask_ids, type_ids, ent_heads, rel_heads, D):
    B, L = token_ids.shape

    # Glue: embedding gather (tiny table lookup; no clean Pallas win here).
    emb = (prep["tok_emb"][token_ids]
           + prep["type_emb"][type_ids]
           + prep["pos_emb"][None, :L, :]).astype(jnp.bfloat16)          # [B, L, H]
    mask_f = mask_ids.astype(jnp.float32).reshape(B, 1, L)               # [B, 1, L]

    # Everything else (encoder layer + 3 GlobalPointer heads) in one pallas_call.
    mention, so_head, so_tail = erenet_fused_forward(
        emb, mask_f, prep, ent_heads, rel_heads, D)
    return mention, so_head, so_tail


if __name__ == "__main__":
    B, L, H = 2, 8, 32
    VOCAB, TYPE_VOCAB = 50, 2
    ENT_HEADS, REL_HEADS, INNER_D = 2, 3, 16

    key = jax.random.PRNGKey(0)
    k_tok, k_par = jax.random.split(key)

    batch_token_ids = jax.random.randint(k_tok, (B, L), 0, VOCAB, dtype=jnp.int32)
    # batch 0 fully valid, batch 1 has 2 padding positions at the end
    lengths = jnp.array([[L], [L - 2]], dtype=jnp.int32)
    batch_mask_ids = (jnp.arange(L, dtype=jnp.int32)[None, :] < lengths).astype(jnp.int32)
    batch_token_type_ids = jnp.zeros((B, L), dtype=jnp.int32)

    raw = build_params(k_par, VOCAB, TYPE_VOCAB, L, H, ENT_HEADS, REL_HEADS, INNER_D)
    prep = prepare_params(raw, L, ENT_HEADS, REL_HEADS, INNER_D)

    fwd = jax.jit(functools.partial(erenet_forward,
                                    ent_heads=ENT_HEADS, rel_heads=REL_HEADS,
                                    D=INNER_D))
    mention, so_head, so_tail = fwd(prep, batch_token_ids, batch_mask_ids,
                                    batch_token_type_ids)
    jax.block_until_ready((mention, so_head, so_tail))

    assert mention.shape == (B, ENT_HEADS, L, L)
    assert so_head.shape == (B, REL_HEADS, L, L)
    assert so_tail.shape == (B, REL_HEADS, L, L)
    assert bool(jnp.all(jnp.isfinite(mention)))
    assert bool(jnp.all(jnp.isfinite(so_head)))
    assert bool(jnp.all(jnp.isfinite(so_tail)))
    print("KERNEL_OK")
</pallas_src>

<mosaic_0001>
module attributes {stable_mosaic.version = 11 : i64} {
  func.func @kernel(%arg0: i32, %arg1: memref<1x8x32xbf16, #tpu.memory_space<vmem>>, %arg2: memref<1x1x8xf32, #tpu.memory_space<vmem>>, %arg3: memref<32x96xbf16, #tpu.memory_space<vmem>>, %arg4: memref<1x96xf32, #tpu.memory_space<vmem>>, %arg5: memref<32x32xbf16, #tpu.memory_space<vmem>>, %arg6: memref<1x32xf32, #tpu.memory_space<vmem>>, %arg7: memref<2x32xf32, #tpu.memory_space<vmem>>, %arg8: memref<32x128xbf16, #tpu.memory_space<vmem>>, %arg9: memref<1x128xf32, #tpu.memory_space<vmem>>, %arg10: memref<128x32xbf16, #tpu.memory_space<vmem>>, %arg11: memref<1x32xf32, #tpu.memory_space<vmem>>, %arg12: memref<2x32xf32, #tpu.memory_space<vmem>>, %arg13: memref<32x320xbf16, #tpu.memory_space<vmem>>, %arg14: memref<1x320xf32, #tpu.memory_space<vmem>>, %arg15: memref<8x64xf32, #tpu.memory_space<vmem>>, %arg16: memref<8x64xf32, #tpu.memory_space<vmem>>, %arg17: memref<1x2x8x8xf32, #tpu.memory_space<vmem>>, %arg18: memref<1x3x8x8xf32, #tpu.memory_space<vmem>>, %arg19: memref<1x3x8x8xf32, #tpu.memory_space<vmem>>) attributes {dimension_semantics = [#tpu.dimension_semantics<parallel>], iteration_bounds = array<i64: 2>, scalar_prefetch = 0 : i64, scratch_operands = 0 : i64, tpu.core_type = #tpu.core_type<tc>, window_params = [{transform_indices = @transform_0, window_bounds = array<i64: 1, 8, 32>}, {transform_indices = @transform_1, window_bounds = array<i64: 1, 1, 8>}, {pipeline_mode = #tpu.pipeline_mode<synchronous>, transform_indices = @transform_2, window_bounds = array<i64: 32, 96>}, {pipeline_mode = #tpu.pipeline_mode<synchronous>, transform_indices = @transform_3, window_bounds = array<i64: 1, 96>}, {pipeline_mode = #tpu.pipeline_mode<synchronous>, transform_indices = @transform_4, window_bounds = array<i64: 32, 32>}, {pipeline_mode = #tpu.pipeline_mode<synchronous>, transform_indices = @transform_5, window_bounds = array<i64: 1, 32>}, {pipeline_mode = #tpu.pipeline_mode<synchronous>, transform_indices = @transform_6, window_bounds = array<i64: 2, 32>}, {pipeline_mode = #tpu.pipeline_mode<synchronous>, transform_indices = @transform_7, window_bounds = array<i64: 32, 128>}, {pipeline_mode = #tpu.pipeline_mode<synchronous>, transform_indices = @transform_8, window_bounds = array<i64: 1, 128>}, {pipeline_mode = #tpu.pipeline_mode<synchronous>, transform_indices = @transform_9, window_bounds = array<i64: 128, 32>}, {pipeline_mode = #tpu.pipeline_mode<synchronous>, transform_indices = @transform_10, window_bounds = array<i64: 1, 32>}, {pipeline_mode = #tpu.pipeline_mode<synchronous>, transform_indices = @transform_11, window_bounds = array<i64: 2, 32>}, {pipeline_mode = #tpu.pipeline_mode<synchronous>, transform_indices = @transform_12, window_bounds = array<i64: 32, 320>}, {pipeline_mode = #tpu.pipeline_mode<synchronous>, transform_indices = @transform_13, window_bounds = array<i64: 1, 320>}, {pipeline_mode = #tpu.pipeline_mode<synchronous>, transform_indices = @transform_14, window_bounds = array<i64: 8, 64>}, {pipeline_mode = #tpu.pipeline_mode<synchronous>, transform_indices = @transform_15, window_bounds = array<i64: 8, 64>}, {transform_indices = @transform_16, window_bounds = array<i64: 1, 2, 8, 8>}, {transform_indices = @transform_17, window_bounds = array<i64: 1, 3, 8, 8>}, {transform_indices = @transform_18, window_bounds = array<i64: 1, 3, 8, 8>}]} {
    %c0 = arith.constant 0 : index
    %c0_0 = arith.constant 0 : index
    %c0_1 = arith.constant 0 : index
    %0 = vector.load %arg1[%c0, %c0_0, %c0_1] : memref<1x8x32xbf16, #tpu.memory_space<vmem>>, vector<1x8x32xbf16>
    %1 = vector.shape_cast %0 : vector<1x8x32xbf16> to vector<8x32xbf16>
    %2 = arith.extf %1 : vector<8x32xbf16> to vector<8x32xf32>
    %c0_2 = arith.constant 0 : index
    %c0_3 = arith.constant 0 : index
    %c0_4 = arith.constant 0 : index
    %3 = vector.load %arg2[%c0_2, %c0_3, %c0_4] : memref<1x1x8xf32, #tpu.memory_space<vmem>>, vector<1x1x8xf32>
    %4 = vector.shape_cast %3 : vector<1x1x8xf32> to vector<1x8xf32>
    %c0_5 = arith.constant 0 : index
    %c0_6 = arith.constant 0 : index
    %5 = vector.load %arg3[%c0_5, %c0_6] : memref<32x96xbf16, #tpu.memory_space<vmem>>, vector<32x96xbf16>
    %cst = arith.constant dense<0.000000e+00> : vector<8x96xf32>
    %6 = tpu.matmul %1, %5, %cst {dimension_numbers = #tpu.dot_dimension_numbers<[1], [0], [0], [1], [0, 0, 1, 1], [], []>} : vector<8x32xbf16>, vector<32x96xbf16>, vector<8x96xf32> -> vector<8x96xf32>
    %c0_7 = arith.constant 0 : index
    %c0_8 = arith.constant 0 : index
    %7 = vector.load %arg4[%c0_7, %c0_8] : memref<1x96xf32, #tpu.memory_space<vmem>>, vector<1x96xf32>
    %8 = vector.broadcast %7 : vector<1x96xf32> to vector<8x96xf32>
    %9 = arith.addf %6, %8 : vector<8x96xf32>
    %10 = vector.extract_strided_slice %9 {offsets = [0, 0], sizes = [8, 32], strides = [1, 1]} : vector<8x96xf32> to vector<8x32xf32>
    %11 = arith.truncf %10 : vector<8x32xf32> to vector<8x32xbf16>
    %12 = vector.extract_strided_slice %9 {offsets = [0, 32], sizes = [8, 32], strides = [1, 1]} : vector<8x96xf32> to vector<8x32xf32>
    %13 = arith.truncf %12 : vector<8x32xf32> to vector<8x32xbf16>
    %14 = vector.extract_strided_slice %9 {offsets = [0, 64], sizes = [8, 32], strides = [1, 1]} : vector<8x96xf32> to vector<8x32xf32>
    %15 = arith.truncf %14 : vector<8x32xf32> to vector<8x32xbf16>
    %cst_9 = arith.constant dense<0.000000e+00> : vector<8x8xf32>
    %16 = tpu.matmul %11, %13, %cst_9 {dimension_numbers = #tpu.dot_dimension_numbers<[1], [1], [0], [0], [0, 0, 1, 0], [], []>} : vector<8x32xbf16>, vector<8x32xbf16>, vector<8x8xf32> -> vector<8x8xf32>
    %cst_10 = arith.constant 0.176776692 : f32
    %17 = vector.broadcast %cst_10 : f32 to vector<8x8xf32>
    %18 = arith.mulf %16, %17 : vector<8x8xf32>
    %cst_11 = arith.constant 1.000000e+00 : f32
    %19 = vector.broadcast %cst_11 : f32 to vector<1x8xf32>
    %20 = arith.subf %19, %4 : vector<1x8xf32>
    %cst_12 = arith.constant -1.000000e+09 : f32
    %21 = vector.broadcast %cst_12 : f32 to vector<1x8xf32>
    %22 = arith.mulf %20, %21 : vector<1x8xf32>
    %23 = vector.broadcast %22 : vector<1x8xf32> to vector<8x8xf32>
    %24 = arith.addf %18, %23 : vector<8x8xf32>
    %cst_13 = arith.constant dense<0xFF800000> : vector<8xf32>
    %25 = vector.multi_reduction <maximumf>, %24, %cst_13 [1] : vector<8x8xf32> to vector<8xf32>
    %26 = vector.shape_cast %25 : vector<8xf32> to vector<8x1xf32>
    %27 = vector.broadcast %26 : vector<8x1xf32> to vector<8x8xf32>
    %28 = arith.subf %24, %27 : vector<8x8xf32>
    %29 = math.exp %28 : vector<8x8xf32>
    %cst_14 = arith.constant dense<0.000000e+00> : vector<8xf32>
    %30 = vector.multi_reduction <add>, %29, %cst_14 [1] : vector<8x8xf32> to vector<8xf32>
    %31 = vector.shape_cast %30 : vector<8xf32> to vector<8x1xf32>
    %32 = tpu.reciprocal %31 {approx = true} : vector<8x1xf32> -> vector<8x1xf32>
    %33 = vector.broadcast %32 : vector<8x1xf32> to vector<8x8xf32>
    %34 = arith.mulf %29, %33 : vector<8x8xf32>
    %35 = arith.truncf %34 : vector<8x8xf32> to vector<8x8xbf16>
    %cst_15 = arith.constant dense<0.000000e+00> : vector<8x32xf32>
    %36 = tpu.matmul %35, %15, %cst_15 {dimension_numbers = #tpu.dot_dimension_numbers<[1], [0], [0], [1], [0, 0, 1, 1], [], []>} : vector<8x8xbf16>, vector<8x32xbf16>, vector<8x32xf32> -> vector<8x32xf32>
    %37 = arith.truncf %36 : vector<8x32xf32> to vector<8x32xbf16>
    %c0_16 = arith.constant 0 : index
    %c0_17 = arith.constant 0 : index
    %38 = vector.load %arg5[%c0_16, %c0_17] : memref<32x32xbf16, #tpu.memory_space<vmem>>, vector<32x32xbf16>
    %cst_18 = arith.constant dense<0.000000e+00> : vector<8x32xf32>
    %39 = tpu.matmul %37, %38, %cst_18 {dimension_numbers = #tpu.dot_dimension_numbers<[1], [0], [0], [1], [0, 0, 1, 1], [], []>} : vector<8x32xbf16>, vector<32x32xbf16>, vector<8x32xf32> -> vector<8x32xf32>
    %c0_19 = arith.constant 0 : index
    %c0_20 = arith.constant 0 : index
    %40 = vector.load %arg6[%c0_19, %c0_20] : memref<1x32xf32, #tpu.memory_space<vmem>>, vector<1x32xf32>
    %41 = vector.broadcast %40 : vector<1x32xf32> to vector<8x32xf32>
    %42 = arith.addf %39, %41 : vector<8x32xf32>
    %43 = arith.addf %2, %42 : vector<8x32xf32>
    %c0_21 = arith.constant 0 : index
    %c0_22 = arith.constant 0 : index
    %44 = vector.load %arg7[%c0_21, %c0_22] : memref<2x32xf32, #tpu.memory_space<vmem>>, vector<2x32xf32>
    %cst_23 = arith.constant dense<0.000000e+00> : vector<8xf32>
    %45 = vector.multi_reduction <add>, %43, %cst_23 [1] : vector<8x32xf32> to vector<8xf32>
    %46 = vector.shape_cast %45 : vector<8xf32> to vector<8x1xf32>
    %cst_24 = arith.constant 3.200000e+01 : f32
    %47 = vector.broadcast %cst_24 : f32 to vector<8x1xf32>
    %48 = arith.divf %46, %47 : vector<8x1xf32>
    %49 = vector.broadcast %48 : vector<8x1xf32> to vector<8x32xf32>
    %50 = arith.subf %43, %49 : vector<8x32xf32>
    %51 = arith.mulf %50, %50 : vector<8x32xf32>
    %cst_25 = arith.constant dense<0.000000e+00> : vector<8xf32>
    %52 = vector.multi_reduction <add>, %51, %cst_25 [1] : vector<8x32xf32> to vector<8xf32>
    %53 = vector.shape_cast %52 : vector<8xf32> to vector<8x1xf32>
    %cst_26 = arith.constant 3.200000e+01 : f32
    %54 = vector.broadcast %cst_26 : f32 to vector<8x1xf32>
    %55 = arith.divf %53, %54 : vector<8x1xf32>
    %56 = vector.broadcast %48 : vector<8x1xf32> to vector<8x32xf32>
    %57 = arith.subf %43, %56 : vector<8x32xf32>
    %cst_27 = arith.constant 9.99999996E-13 : f32
    %58 = vector.broadcast %cst_27 : f32 to vector<8x1xf32>
    %59 = arith.addf %55, %58 : vector<8x1xf32>
    %60 = math.rsqrt %59 : vector<8x1xf32>
    %61 = vector.broadcast %60 : vector<8x1xf32> to vector<8x32xf32>
    %62 = arith.mulf %57, %61 : vector<8x32xf32>
    %63 = vector.extract_strided_slice %44 {offsets = [0, 0], sizes = [1, 32], strides = [1, 1]} : vector<2x32xf32> to vector<1x32xf32>
    %64 = vector.broadcast %63 : vector<1x32xf32> to vector<8x32xf32>
    %65 = arith.mulf %62, %64 : vector<8x32xf32>
    %66 = vector.extract_strided_slice %44 {offsets = [1, 0], sizes = [1, 32], strides = [1, 1]} : vector<2x32xf32> to vector<1x32xf32>
    %67 = vector.broadcast %66 : vector<1x32xf32> to vector<8x32xf32>
    %68 = arith.addf %65, %67 : vector<8x32xf32>
    %69 = arith.truncf %68 : vector<8x32xf32> to vector<8x32xbf16>
    %c0_28 = arith.constant 0 : index
    %c0_29 = arith.constant 0 : index
    %70 = vector.load %arg8[%c0_28, %c0_29] : memref<32x128xbf16, #tpu.memory_space<vmem>>, vector<32x128xbf16>
    %cst_30 = arith.constant dense<0.000000e+00> : vector<8x128xf32>
    %71 = tpu.matmul %69, %70, %cst_30 {dimension_numbers = #tpu.dot_dimension_numbers<[1], [0], [0], [1], [0, 0, 1, 1], [], []>} : vector<8x32xbf16>, vector<32x128xbf16>, vector<8x128xf32> -> vector<8x128xf32>
    %c0_31 = arith.constant 0 : index
    %c0_32 = arith.constant 0 : index
    %72 = vector.load %arg9[%c0_31, %c0_32] : memref<1x128xf32, #tpu.memory_space<vmem>>, vector<1x128xf32>
    %73 = vector.broadcast %72 : vector<1x128xf32> to vector<8x128xf32>
    %74 = arith.addf %71, %73 : vector<8x128xf32>
    %75 = arith.mulf %74, %74 : vector<8x128xf32>
    %76 = arith.mulf %74, %75 : vector<8x128xf32>
    %cst_33 = arith.constant 4.471500e-02 : f32
    %77 = vector.broadcast %cst_33 : f32 to vector<8x128xf32>
    %78 = arith.mulf %77, %76 : vector<8x128xf32>
    %79 = arith.addf %74, %78 : vector<8x128xf32>
    %cst_34 = arith.constant 0.797884583 : f32
    %80 = vector.broadcast %cst_34 : f32 to vector<8x128xf32>
    %81 = arith.mulf %80, %79 : vector<8x128xf32>
    %82 = math.tanh %81 : vector<8x128xf32>
    %cst_35 = arith.constant 1.000000e+00 : f32
    %83 = vector.broadcast %cst_35 : f32 to vector<8x128xf32>
    %84 = arith.addf %83, %82 : vector<8x128xf32>
    %cst_36 = arith.constant 5.000000e-01 : f32
    %85 = vector.broadcast %cst_36 : f32 to vector<8x128xf32>
    %86 = arith.mulf %85, %84 : vector<8x128xf32>
    %87 = arith.mulf %74, %86 : vector<8x128xf32>
    %88 = arith.truncf %87 : vector<8x128xf32> to vector<8x128xbf16>
    %c0_37 = arith.constant 0 : index
    %c0_38 = arith.constant 0 : index
    %89 = vector.load %arg10[%c0_37, %c0_38] : memref<128x32xbf16, #tpu.memory_space<vmem>>, vector<128x32xbf16>
    %cst_39 = arith.constant dense<0.000000e+00> : vector<8x32xf32>
    %90 = tpu.matmul %88, %89, %cst_39 {dimension_numbers = #tpu.dot_dimension_numbers<[1], [0], [0], [1], [0, 0, 1, 1], [], []>} : vector<8x128xbf16>, vector<128x32xbf16>, vector<8x32xf32> -> vector<8x32xf32>
    %c0_40 = arith.constant 0 : index
    %c0_41 = arith.constant 0 : index
    %91 = vector.load %arg11[%c0_40, %c0_41] : memref<1x32xf32, #tpu.memory_space<vmem>>, vector<1x32xf32>
    %92 = vector.broadcast %91 : vector<1x32xf32> to vector<8x32xf32>
    %93 = arith.addf %90, %92 : vector<8x32xf32>
    %94 = arith.addf %68, %93 : vector<8x32xf32>
    %c0_42 = arith.constant 0 : index
    %c0_43 = arith.constant 0 : index
    %95 = vector.load %arg12[%c0_42, %c0_43] : memref<2x32xf32, #tpu.memory_space<vmem>>, vector<2x32xf32>
    %cst_44 = arith.constant dense<0.000000e+00> : vector<8xf32>
    %96 = vector.multi_reduction <add>, %94, %cst_44 [1] : vector<8x32xf32> to vector<8xf32>
    %97 = vector.shape_cast %96 : vector<8xf32> to vector<8x1xf32>
    %cst_45 = arith.constant 3.200000e+01 : f32
    %98 = vector.broadcast %cst_45 : f32 to vector<8x1xf32>
    %99 = arith.divf %97, %98 : vector<8x1xf32>
    %100 = vector.broadcast %99 : vector<8x1xf32> to vector<8x32xf32>
    %101 = arith.subf %94, %100 : vector<8x32xf32>
    %102 = arith.mulf %101, %101 : vector<8x32xf32>
    %cst_46 = arith.constant dense<0.000000e+00> : vector<8xf32>
    %103 = vector.multi_reduction <add>, %102, %cst_46 [1] : vector<8x32xf32> to vector<8xf32>
    %104 = vector.shape_cast %103 : vector<8xf32> to vector<8x1xf32>
    %cst_47 = arith.constant 3.200000e+01 : f32
    %105 = vector.broadcast %cst_47 : f32 to vector<8x1xf32>
    %106 = arith.divf %104, %105 : vector<8x1xf32>
    %107 = vector.broadcast %99 : vector<8x1xf32> to vector<8x32xf32>
    %108 = arith.subf %94, %107 : vector<8x32xf32>
    %cst_48 = arith.constant 9.99999996E-13 : f32
    %109 = vector.broadcast %cst_48 : f32 to vector<8x1xf32>
    %110 = arith.addf %106, %109 : vector<8x1xf32>
    %111 = math.rsqrt %110 : vector<8x1xf32>
    %112 = vector.broadcast %111 : vector<8x1xf32> to vector<8x32xf32>
    %113 = arith.mulf %108, %112 : vector<8x32xf32>
    %114 = vector.extract_strided_slice %95 {offsets = [0, 0], sizes = [1, 32], strides = [1, 1]} : vector<2x32xf32> to vector<1x32xf32>
    %115 = vector.broadcast %114 : vector<1x32xf32> to vector<8x32xf32>
    %116 = arith.mulf %113, %115 : vector<8x32xf32>
    %117 = vector.extract_strided_slice %95 {offsets = [1, 0], sizes = [1, 32], strides = [1, 1]} : vector<2x32xf32> to vector<1x32xf32>
    %118 = vector.broadcast %117 : vector<1x32xf32> to vector<8x32xf32>
    %119 = arith.addf %116, %118 : vector<8x32xf32>
    %120 = arith.truncf %119 : vector<8x32xf32> to vector<8x32xbf16>
    %c0_49 = arith.constant 0 : index
    %c0_50 = arith.constant 0 : index
    %121 = vector.load %arg13[%c0_49, %c0_50] : memref<32x320xbf16, #tpu.memory_space<vmem>>, vector<32x320xbf16>
    %cst_51 = arith.constant dense<0.000000e+00> : vector<8x320xf32>
    %122 = tpu.matmul %120, %121, %cst_51 {dimension_numbers = #tpu.dot_dimension_numbers<[1], [0], [0], [1], [0, 0, 1, 1], [], []>} : vector<8x32xbf16>, vector<32x320xbf16>, vector<8x320xf32> -> vector<8x320xf32>
    %c0_52 = arith.constant 0 : index
    %c0_53 = arith.constant 0 : index
    %123 = vector.load %arg14[%c0_52, %c0_53] : memref<1x320xf32, #tpu.memory_space<vmem>>, vector<1x320xf32>
    %124 = vector.broadcast %123 : vector<1x320xf32> to vector<8x320xf32>
    %125 = arith.addf %122, %124 : vector<8x320xf32>
    %126 = vector.extract_strided_slice %125 {offsets = [0, 0], sizes = [8, 64], strides = [1, 1]} : vector<8x320xf32> to vector<8x64xf32>
    %127 = vector.extract_strided_slice %125 {offsets = [0, 64], sizes = [8, 64], strides = [1, 1]} : vector<8x320xf32> to vector<8x64xf32>
    %128 = vector.extract_strided_slice %125 {offsets = [0, 128], sizes = [8, 96], strides = [1, 1]} : vector<8x320xf32> to vector<8x96xf32>
    %129 = vector.extract_strided_slice %125 {offsets = [0, 224], sizes = [8, 96], strides = [1, 1]} : vector<8x320xf32> to vector<8x96xf32>
    %c0_54 = arith.constant 0 : index
    %c0_55 = arith.constant 0 : index
    %130 = vector.load %arg15[%c0_54, %c0_55] : memref<8x64xf32, #tpu.memory_space<vmem>>, vector<8x64xf32>
    %131 = arith.mulf %126, %130 : vector<8x64xf32>
    %c0_56 = arith.constant 0 : index
    %c0_57 = arith.constant 0 : index
    %132 = vector.load %arg16[%c0_56, %c0_57] : memref<8x64xf32, #tpu.memory_space<vmem>>, vector<8x64xf32>
    %133 = arith.mulf %127, %132 : vector<8x64xf32>
    %134 = arith.addf %131, %133 : vector<8x64xf32>
    %135 = tpu.transpose %4, [1, 0] : vector<1x8xf32> -> vector<8x1xf32>
    %136 = vector.broadcast %135 : vector<8x1xf32> to vector<8x8xf32>
    %137 = vector.broadcast %4 : vector<1x8xf32> to vector<8x8xf32>
    %138 = arith.mulf %136, %137 : vector<8x8xf32>
    %cst_58 = arith.constant 1.000000e+00 : f32
    %139 = vector.broadcast %cst_58 : f32 to vector<8x8xf32>
    %140 = arith.subf %139, %138 : vector<8x8xf32>
    %cst_59 = arith.constant -9.99999995E+11 : f32
    %141 = vector.broadcast %cst_59 : f32 to vector<8x8xf32>
    %142 = arith.mulf %140, %141 : vector<8x8xf32>
    %143 = tpu.iota {dimensions = array<i32: 0>} : vector<8x8xi32>
    %144 = tpu.iota {dimensions = array<i32: 1>} : vector<8x8xi32>
    %145 = arith.cmpi sgt, %143, %144 : vector<8x8xi32>
    %cst_60 = arith.constant -9.99999995E+11 : f32
    %cst_61 = arith.constant 0.000000e+00 : f32
    %146 = vector.broadcast %cst_60 : f32 to vector<8x8xf32>
    %147 = vector.broadcast %cst_61 : f32 to vector<8x8xf32>
    %148 = arith.select %145, %146, %147 : vector<8x8xi1>, vector<8x8xf32>
    %149 = arith.addf %142, %148 : vector<8x8xf32>
    %150 = vector.extract_strided_slice %134 {offsets = [0, 0], sizes = [8, 16], strides = [1, 1]} : vector<8x64xf32> to vector<8x16xf32>
    %151 = vector.extract_strided_slice %134 {offsets = [0, 16], sizes = [8, 16], strides = [1, 1]} : vector<8x64xf32> to vector<8x16xf32>
    %cst_62 = arith.constant dense<0.000000e+00> : vector<8x8xf32>
    %152 = tpu.matmul %150, %151, %cst_62 {dimension_numbers = #tpu.dot_dimension_numbers<[1], [1], [0], [0], [0, 0, 1, 0], [], []>} : vector<8x16xf32>, vector<8x16xf32>, vector<8x8xf32> -> vector<8x8xf32>
    %153 = arith.addf %152, %149 : vector<8x8xf32>
    %c0_63 = arith.constant 0 : index
    %c0_64 = arith.constant 0 : index
    %c0_65 = arith.constant 0 : index
    %c0_66 = arith.constant 0 : index
    %154 = vector.load %arg17[%c0_63, %c0_64, %c0_65, %c0_66] : memref<1x2x8x8xf32, #tpu.memory_space<vmem>>, vector<1x1x8x8xf32>
    %155 = vector.shape_cast %154 : vector<1x1x8x8xf32> to vector<8x8xf32>
    %156 = vector.shape_cast %153 : vector<8x8xf32> to vector<1x1x8x8xf32>
    tpu.vector_store %arg17[%c0_63, %c0_64, %c0_65, %c0_66], %156 {strides = array<i32>} : memref<1x2x8x8xf32, #tpu.memory_space<vmem>>, vector<1x1x8x8xf32>,
    %157 = vector.extract_strided_slice %134 {offsets = [0, 32], sizes = [8, 16], strides = [1, 1]} : vector<8x64xf32> to vector<8x16xf32>
    %158 = vector.extract_strided_slice %134 {offsets = [0, 48], sizes = [8, 16], strides = [1, 1]} : vector<8x64xf32> to vector<8x16xf32>
    %cst_67 = arith.constant dense<0.000000e+00> : vector<8x8xf32>
    %159 = tpu.matmul %157, %158, %cst_67 {dimension_numbers = #tpu.dot_dimension_numbers<[1], [1], [0], [0], [0, 0, 1, 0], [], []>} : vector<8x16xf32>, vector<8x16xf32>, vector<8x8xf32> -> vector<8x8xf32>
    %160 = arith.addf %159, %149 : vector<8x8xf32>
    %c0_68 = arith.constant 0 : index
    %c1 = arith.constant 1 : index
    %c0_69 = arith.constant 0 : index
    %c0_70 = arith.constant 0 : index
    %161 = vector.load %arg17[%c0_68, %c1, %c0_69, %c0_70] : memref<1x2x8x8xf32, #tpu.memory_space<vmem>>, vector<1x1x8x8xf32>
    %162 = vector.shape_cast %161 : vector<1x1x8x8xf32> to vector<8x8xf32>
    %163 = vector.shape_cast %160 : vector<8x8xf32> to vector<1x1x8x8xf32>
    tpu.vector_store %arg17[%c0_68, %c1, %c0_69, %c0_70], %163 {strides = array<i32>} : memref<1x2x8x8xf32, #tpu.memory_space<vmem>>, vector<1x1x8x8xf32>,
    %164 = vector.extract_strided_slice %128 {offsets = [0, 0], sizes = [8, 16], strides = [1, 1]} : vector<8x96xf32> to vector<8x16xf32>
    %165 = vector.extract_strided_slice %128 {offsets = [0, 16], sizes = [8, 16], strides = [1, 1]} : vector<8x96xf32> to vector<8x16xf32>
    %cst_71 = arith.constant dense<0.000000e+00> : vector<8x8xf32>
    %166 = tpu.matmul %164, %165, %cst_71 {dimension_numbers = #tpu.dot_dimension_numbers<[1], [1], [0], [0], [0, 0, 1, 0], [], []>} : vector<8x16xf32>, vector<8x16xf32>, vector<8x8xf32> -> vector<8x8xf32>
    %167 = arith.addf %166, %142 : vector<8x8xf32>
    %c0_72 = arith.constant 0 : index
    %c0_73 = arith.constant 0 : index
    %c0_74 = arith.constant 0 : index
    %c0_75 = arith.constant 0 : index
    %168 = vector.load %arg18[%c0_72, %c0_73, %c0_74, %c0_75] : memref<1x3x8x8xf32, #tpu.memory_space<vmem>>, vector<1x1x8x8xf32>
    %169 = vector.shape_cast %168 : vector<1x1x8x8xf32> to vector<8x8xf32>
    %170 = vector.shape_cast %167 : vector<8x8xf32> to vector<1x1x8x8xf32>
    tpu.vector_store %arg18[%c0_72, %c0_73, %c0_74, %c0_75], %170 {strides = array<i32>} : memref<1x3x8x8xf32, #tpu.memory_space<vmem>>, vector<1x1x8x8xf32>,
    %171 = vector.extract_strided_slice %129 {offsets = [0, 0], sizes = [8, 16], strides = [1, 1]} : vector<8x96xf32> to vector<8x16xf32>
    %172 = vector.extract_strided_slice %129 {offsets = [0, 16], sizes = [8, 16], strides = [1, 1]} : vector<8x96xf32> to vector<8x16xf32>
    %cst_76 = arith.constant dense<0.000000e+00> : vector<8x8xf32>
    %173 = tpu.matmul %171, %172, %cst_76 {dimension_numbers = #tpu.dot_dimension_numbers<[1], [1], [0], [0], [0, 0, 1, 0], [], []>} : vector<8x16xf32>, vector<8x16xf32>, vector<8x8xf32> -> vector<8x8xf32>
    %174 = arith.addf %173, %142 : vector<8x8xf32>
    %c0_77 = arith.constant 0 : index
    %c0_78 = arith.constant 0 : index
    %c0_79 = arith.constant 0 : index
    %c0_80 = arith.constant 0 : index
    %175 = vector.load %arg19[%c0_77, %c0_78, %c0_79, %c0_80] : memref<1x3x8x8xf32, #tpu.memory_space<vmem>>, vector<1x1x8x8xf32>
    %176 = vector.shape_cast %175 : vector<1x1x8x8xf32> to vector<8x8xf32>
    %177 = vector.shape_cast %174 : vector<8x8xf32> to vector<1x1x8x8xf32>
    tpu.vector_store %arg19[%c0_77, %c0_78, %c0_79, %c0_80], %177 {strides = array<i32>} : memref<1x3x8x8xf32, #tpu.memory_space<vmem>>, vector<1x1x8x8xf32>,
    %178 = vector.extract_strided_slice %128 {offsets = [0, 32], sizes = [8, 16], strides = [1, 1]} : vector<8x96xf32> to vector<8x16xf32>
    %179 = vector.extract_strided_slice %128 {offsets = [0, 48], sizes = [8, 16], strides = [1, 1]} : vector<8x96xf32> to vector<8x16xf32>
    %cst_81 = arith.constant dense<0.000000e+00> : vector<8x8xf32>
    %180 = tpu.matmul %178, %179, %cst_81 {dimension_numbers = #tpu.dot_dimension_numbers<[1], [1], [0], [0], [0, 0, 1, 0], [], []>} : vector<8x16xf32>, vector<8x16xf32>, vector<8x8xf32> -> vector<8x8xf32>
    %181 = arith.addf %180, %142 : vector<8x8xf32>
    %c0_82 = arith.constant 0 : index
    %c1_83 = arith.constant 1 : index
    %c0_84 = arith.constant 0 : index
    %c0_85 = arith.constant 0 : index
    %182 = vector.load %arg18[%c0_82, %c1_83, %c0_84, %c0_85] : memref<1x3x8x8xf32, #tpu.memory_space<vmem>>, vector<1x1x8x8xf32>
    %183 = vector.shape_cast %182 : vector<1x1x8x8xf32> to vector<8x8xf32>
    %184 = vector.shape_cast %181 : vector<8x8xf32> to vector<1x1x8x8xf32>
    tpu.vector_store %arg18[%c0_82, %c1_83, %c0_84, %c0_85], %184 {strides = array<i32>} : memref<1x3x8x8xf32, #tpu.memory_space<vmem>>, vector<1x1x8x8xf32>,
    %185 = vector.extract_strided_slice %129 {offsets = [0, 32], sizes = [8, 16], strides = [1, 1]} : vector<8x96xf32> to vector<8x16xf32>
    %186 = vector.extract_strided_slice %129 {offsets = [0, 48], sizes = [8, 16], strides = [1, 1]} : vector<8x96xf32> to vector<8x16xf32>
    %cst_86 = arith.constant dense<0.000000e+00> : vector<8x8xf32>
    %187 = tpu.matmul %185, %186, %cst_86 {dimension_numbers = #tpu.dot_dimension_numbers<[1], [1], [0], [0], [0, 0, 1, 0], [], []>} : vector<8x16xf32>, vector<8x16xf32>, vector<8x8xf32> -> vector<8x8xf32>
    %188 = arith.addf %187, %142 : vector<8x8xf32>
    %c0_87 = arith.constant 0 : index
    %c1_88 = arith.constant 1 : index
    %c0_89 = arith.constant 0 : index
    %c0_90 = arith.constant 0 : index
    %189 = vector.load %arg19[%c0_87, %c1_88, %c0_89, %c0_90] : memref<1x3x8x8xf32, #tpu.memory_space<vmem>>, vector<1x1x8x8xf32>
    %190 = vector.shape_cast %189 : vector<1x1x8x8xf32> to vector<8x8xf32>
    %191 = vector.shape_cast %188 : vector<8x8xf32> to vector<1x1x8x8xf32>
    tpu.vector_store %arg19[%c0_87, %c1_88, %c0_89, %c0_90], %191 {strides = array<i32>} : memref<1x3x8x8xf32, #tpu.memory_space<vmem>>, vector<1x1x8x8xf32>,
    %192 = vector.extract_strided_slice %128 {offsets = [0, 64], sizes = [8, 16], strides = [1, 1]} : vector<8x96xf32> to vector<8x16xf32>
    %193 = vector.extract_strided_slice %128 {offsets = [0, 80], sizes = [8, 16], strides = [1, 1]} : vector<8x96xf32> to vector<8x16xf32>
    %cst_91 = arith.constant dense<0.000000e+00> : vector<8x8xf32>
    %194 = tpu.matmul %192, %193, %cst_91 {dimension_numbers = #tpu.dot_dimension_numbers<[1], [1], [0], [0], [0, 0, 1, 0], [], []>} : vector<8x16xf32>, vector<8x16xf32>, vector<8x8xf32> -> vector<8x8xf32>
    %195 = arith.addf %194, %142 : vector<8x8xf32>
    %c0_92 = arith.constant 0 : index
    %c2 = arith.constant 2 : index
    %c0_93 = arith.constant 0 : index
    %c0_94 = arith.constant 0 : index
    %196 = vector.load %arg18[%c0_92, %c2, %c0_93, %c0_94] : memref<1x3x8x8xf32, #tpu.memory_space<vmem>>, vector<1x1x8x8xf32>
    %197 = vector.shape_cast %196 : vector<1x1x8x8xf32> to vector<8x8xf32>
    %198 = vector.shape_cast %195 : vector<8x8xf32> to vector<1x1x8x8xf32>
    tpu.vector_store %arg18[%c0_92, %c2, %c0_93, %c0_94], %198 {strides = array<i32>} : memref<1x3x8x8xf32, #tpu.memory_space<vmem>>, vector<1x1x8x8xf32>,
    %199 = vector.extract_strided_slice %129 {offsets = [0, 64], sizes = [8, 16], strides = [1, 1]} : vector<8x96xf32> to vector<8x16xf32>
    %200 = vector.extract_strided_slice %129 {offsets = [0, 80], sizes = [8, 16], strides = [1, 1]} : vector<8x96xf32> to vector<8x16xf32>
    %cst_95 = arith.constant dense<0.000000e+00> : vector<8x8xf32>
    %201 = tpu.matmul %199, %200, %cst_95 {dimension_numbers = #tpu.dot_dimension_numbers<[1], [1], [0], [0], [0, 0, 1, 0], [], []>} : vector<8x16xf32>, vector<8x16xf32>, vector<8x8xf32> -> vector<8x8xf32>
    %202 = arith.addf %201, %142 : vector<8x8xf32>
    %c0_96 = arith.constant 0 : index
    %c2_97 = arith.constant 2 : index
    %c0_98 = arith.constant 0 : index
    %c0_99 = arith.constant 0 : index
    %203 = vector.load %arg19[%c0_96, %c2_97, %c0_98, %c0_99] : memref<1x3x8x8xf32, #tpu.memory_space<vmem>>, vector<1x1x8x8xf32>
    %204 = vector.shape_cast %203 : vector<1x1x8x8xf32> to vector<8x8xf32>
    %205 = vector.shape_cast %202 : vector<8x8xf32> to vector<1x1x8x8xf32>
    tpu.vector_store %arg19[%c0_96, %c2_97, %c0_98, %c0_99], %205 {strides = array<i32>} : memref<1x3x8x8xf32, #tpu.memory_space<vmem>>, vector<1x1x8x8xf32>,
    return
  }
  func.func @transform_0(%arg0: i32) -> (i32, i32, i32) {
    %c0_i32 = arith.constant 0 : i32
    %c0_i32_0 = arith.constant 0 : i32
    %c0_i32_1 = arith.constant 0 : i32
    return %arg0, %c0_i32, %c0_i32_0 : i32, i32, i32
  }
  func.func @transform_1(%arg0: i32) -> (i32, i32, i32) {
    %c0_i32 = arith.constant 0 : i32
    %c0_i32_0 = arith.constant 0 : i32
    %c0_i32_1 = arith.constant 0 : i32
    return %arg0, %c0_i32, %c0_i32_0 : i32, i32, i32
  }
  func.func @transform_2(%arg0: i32) -> (i32, i32) {
    %c0_i32 = arith.constant 0 : i32
    %c0_i32_0 = arith.constant 0 : i32
    %c0_i32_1 = arith.constant 0 : i32
    return %c0_i32, %c0_i32_0 : i32, i32
  }
  func.func @transform_3(%arg0: i32) -> (i32, i32) {
    %c0_i32 = arith.constant 0 : i32
    %c0_i32_0 = arith.constant 0 : i32
    %c0_i32_1 = arith.constant 0 : i32
    return %c0_i32, %c0_i32_0 : i32, i32
  }
  func.func @transform_4(%arg0: i32) -> (i32, i32) {
    %c0_i32 = arith.constant 0 : i32
    %c0_i32_0 = arith.constant 0 : i32
    %c0_i32_1 = arith.constant 0 : i32
    return %c0_i32, %c0_i32_0 : i32, i32
  }
  func.func @transform_5(%arg0: i32) -> (i32, i32) {
    %c0_i32 = arith.constant 0 : i32
    %c0_i32_0 = arith.constant 0 : i32
    %c0_i32_1 = arith.constant 0 : i32
    return %c0_i32, %c0_i32_0 : i32, i32
  }
  func.func @transform_6(%arg0: i32) -> (i32, i32) {
    %c0_i32 = arith.constant 0 : i32
    %c0_i32_0 = arith.constant 0 : i32
    %c0_i32_1 = arith.constant 0 : i32
    return %c0_i32, %c0_i32_0 : i32, i32
  }
  func.func @transform_7(%arg0: i32) -> (i32, i32) {
    %c0_i32 = arith.constant 0 : i32
    %c0_i32_0 = arith.constant 0 : i32
    %c0_i32_1 = arith.constant 0 : i32
    return %c0_i32, %c0_i32_0 : i32, i32
  }
  func.func @transform_8(%arg0: i32) -> (i32, i32) {
    %c0_i32 = arith.constant 0 : i32
    %c0_i32_0 = arith.constant 0 : i32
    %c0_i32_1 = arith.constant 0 : i32
    return %c0_i32, %c0_i32_0 : i32, i32
  }
  func.func @transform_9(%arg0: i32) -> (i32, i32) {
    %c0_i32 = arith.constant 0 : i32
    %c0_i32_0 = arith.constant 0 : i32
    %c0_i32_1 = arith.constant 0 : i32
    return %c0_i32, %c0_i32_0 : i32, i32
  }
  func.func @transform_10(%arg0: i32) -> (i32, i32) {
    %c0_i32 = arith.constant 0 : i32
    %c0_i32_0 = arith.constant 0 : i32
    %c0_i32_1 = arith.constant 0 : i32
    return %c0_i32, %c0_i32_0 : i32, i32
  }
  func.func @transform_11(%arg0: i32) -> (i32, i32) {
    %c0_i32 = arith.constant 0 : i32
    %c0_i32_0 = arith.constant 0 : i32
    %c0_i32_1 = arith.constant 0 : i32
    return %c0_i32, %c0_i32_0 : i32, i32
  }
  func.func @transform_12(%arg0: i32) -> (i32, i32) {
    %c0_i32 = arith.constant 0 : i32
    %c0_i32_0 = arith.constant 0 : i32
    %c0_i32_1 = arith.constant 0 : i32
    return %c0_i32, %c0_i32_0 : i32, i32
  }
  func.func @transform_13(%arg0: i32) -> (i32, i32) {
    %c0_i32 = arith.constant 0 : i32
    %c0_i32_0 = arith.constant 0 : i32
    %c0_i32_1 = arith.constant 0 : i32
    return %c0_i32, %c0_i32_0 : i32, i32
  }
  func.func @transform_14(%arg0: i32) -> (i32, i32) {
    %c0_i32 = arith.constant 0 : i32
    %c0_i32_0 = arith.constant 0 : i32
    %c0_i32_1 = arith.constant 0 : i32
    return %c0_i32, %c0_i32_0 : i32, i32
  }
  func.func @transform_15(%arg0: i32) -> (i32, i32) {
    %c0_i32 = arith.constant 0 : i32
    %c0_i32_0 = arith.constant 0 : i32
    %c0_i32_1 = arith.constant 0 : i32
    return %c0_i32, %c0_i32_0 : i32, i32
  }
  func.func @transform_16(%arg0: i32) -> (i32, i32, i32, i32) {
    %c0_i32 = arith.constant 0 : i32
    %c0_i32_0 = arith.constant 0 : i32
    %c0_i32_1 = arith.constant 0 : i32
    %c0_i32_2 = arith.constant 0 : i32
    return %arg0, %c0_i32, %c0_i32_0, %c0_i32_1 : i32, i32, i32, i32
  }
  func.func @transform_17(%arg0: i32) -> (i32, i32, i32, i32) {
    %c0_i32 = arith.constant 0 : i32
    %c0_i32_0 = arith.constant 0 : i32
    %c0_i32_1 = arith.constant 0 : i32
    %c0_i32_2 = arith.constant 0 : i32
    return %arg0, %c0_i32, %c0_i32_0, %c0_i32_1 : i32, i32, i32, i32
  }
  func.func @transform_18(%arg0: i32) -> (i32, i32, i32, i32) {
    %c0_i32 = arith.constant 0 : i32
    %c0_i32_0 = arith.constant 0 : i32
    %c0_i32_1 = arith.constant 0 : i32
    %c0_i32_2 = arith.constant 0 : i32
    return %arg0, %c0_i32, %c0_i32_0, %c0_i32_1 : i32, i32, i32, i32
  }
}

</mosaic_0001>

<bundles_post_ra>
// kernel: erenet_forward.1
= control target key start
LH: loop header
LB: loop body
LE: loop exit
PB: predicated region body
PF: predicated region fallthrough
CT: control target
= control target key end

     0   :  { %s3096_s0 = inlined_call_operand.vmem [shape: bf16[2,8,32], index: 0, kind: input, shape index: {}]   ;;  %s3097_s1 = inlined_call_operand.vmem [shape: f32[2,1,8], index: 1, kind: input, shape index: {}]   ;;  %s3098_s2 = inlined_call_operand.vmem [shape: bf16[32,96], index: 2, kind: input, shape index: {}]   ;;  %s3099_s3 = inlined_call_operand.vmem [shape: f32[1,96], index: 3, kind: input, shape index: {}]   ;;  %s3100_s4 = inlined_call_operand.vmem [shape: bf16[32,32], index: 4, kind: input, shape index: {}]   ;;  %s3101_s5 = inlined_call_operand.vmem [shape: f32[1,32], index: 5, kind: input, shape index: {}]   ;;  %s3102_s6 = inlined_call_operand.vmem [shape: f32[2,32], index: 6, kind: input, shape index: {}]   ;;  %s3103_s7 = inlined_call_operand.vmem [shape: bf16[32,128], index: 7, kind: input, shape index: {}]   ;;  %s3104_s8 = inlined_call_operand.vmem [shape: f32[1,128], index: 8, kind: input, shape index: {}]   ;;  %s3105_s9 = inlined_call_operand.vmem [shape: bf16[128,32], index: 9, kind: input, shape index: {}]   ;;  %s3106_s10 = inlined_call_operand.vmem [shape: f32[1,32], index: 10, kind: input, shape index: {}]   ;;  %s3107_s11 = inlined_call_operand.vmem [shape: f32[2,32], index: 11, kind: input, shape index: {}]   ;;  %s3108_s12 = inlined_call_operand.vmem [shape: bf16[32,320], index: 12, kind: input, shape index: {}]   ;;  %s3109_s13 = inlined_call_operand.vmem [shape: f32[1,320], index: 13, kind: input, shape index: {}]   ;;  %s3110_s14 = inlined_call_operand.vmem [shape: f32[8,64], index: 14, kind: input, shape index: {}]   ;;  %s3111_s15 = inlined_call_operand.vmem [shape: f32[8,64], index: 15, kind: input, shape index: {}]   ;;  %s3112_s16 = inlined_call_operand.hbm [shape: f32[2,2,8,8], index: 16, kind: output, shape index: {0}]   ;;  %s3113_s17 = inlined_call_operand.hbm [shape: f32[2,3,8,8], index: 17, kind: output, shape index: {1}]   ;;  %s3114_s18 = inlined_call_operand.hbm [shape: f32[2,3,8,8], index: 18, kind: output, shape index: {2}]  }
   0x1   :  { %3128 = sst [smem:[#allocation12_spill]] %s3096_s0 }
   0x2   :  { %3129 = sst [smem:[#allocation13_spill]] %s3097_s1 }
   0x3   :  { %3130 = sst [smem:[#allocation14_spill]] %s3098_s2 }
   0x4   :  { %3131 = sst [smem:[#allocation15_spill]] %s3099_s3 }
   0x5   :  { %3132 = sst [smem:[#allocation16_spill]] %s3100_s4 }
   0x6   :  { %3133 = sst [smem:[#allocation17_spill]] %s3101_s5 }
   0x7   :  { %3134 = sst [smem:[#allocation18_spill]] %s3102_s6 }
   0x8   :  { %3135 = sst [smem:[#allocation19_spill]] %s3103_s7 }
   0x9   :  { %3136 = sst [smem:[#allocation20_spill]] %s3104_s8 }
   0xa   :  { %24 = vsyncpa [#allocation3], 0 }
   0xb   :  { %26 = vsyncpa [#allocation3 + $0x1], 0 }
   0xc   :  { %27 = vsyncpa [#allocation5], 0 }
   0xd   :  { %29 = vsyncpa [#allocation5 + $0x1], 0  ;;  %s2670_s27 = smov 0   ;;  %s2672_s28 = smov 0  }
   0xe   :  { %s2674_s29 = smov 0   ;;  %s2676_s30 = smov 0  }
   0xf LB: > { %3137 = sst [smem:[#allocation9_spill]] %s2554_s29  ;;  %s2691_s0 = sadd.s32 4294967295, %s2558_s30   ;;  %s2558_s30 = sphi %s2676_s30, %s3159_s30   ;;  %s2554_s29 = sphi %s2674_s29, %s3161_s29   ;;  %s2550_s28 = sphi %s2672_s28, %s3163_s28   ;;  %s2546_s27 = sphi %s2670_s27, %s3162_s27  }
  0x10   : > { %s3116_s19 = sadd.s32 4294967294, %s2558_s30   ;;  %s2695_s1 = sadd.s32 1, %s2558_s30  }
  0x11   : > { %3138 = sst [smem:[#allocation10_spill]] %s2695_s1  ;;  %s388_s20 = sadd.s32 1, %s2554_s29 }
  0x12   : > { %s385_s21 = ssub.s32 %s2558_s30, %s2695_s1  ;;  %p398_p0 = scmp.ne.s32.totalorder %s2554_s29, %s2550_s28 }
  0x13   : > { %p386_p1 = scmp.eq.s32.totalorder %s385_s21, 0  ;;  %p399_p2 = scmp.eq.s32.totalorder %s2691_s0, 1 }
  0x14   : > { %p404_p3 = scmp.ne.s32.totalorder %s2550_s28, %s2546_s27  ;;  %p405_p4 = scmp.eq.s32.totalorder %s3116_s19, 1 }
  0x15   : > { %s2708_s22 = scalar_select %p386_p1, %s2554_s29, %s388_s20  }
  0x16   : > { %p2710_p5 = por %p399_p2, %p398_p0  ;;  %p2714_p6 = por %p405_p4, %p404_p3 }
  0x17   : > { %3139 = sst [smem:[#allocation11_spill]] %s2708_s22  ;;  %p2136_p7 = scmp.ge.s32.totalorder %s2558_s30, 1 }
  0x18   : > { %p530_p8 = scmp.lt.s32.totalorder %s2558_s30, 3 }
  0x1a   : > { %p531_p9 = pnand %p2136_p7, %p530_p8 }
  0x1b   : > { %s3142_s26 = sld [smem:[#allocation14_spill]] (!%p531_p9)  ;;  %p596_p10 = scmp.lt.s32.totalorder (!%p531_p9), %s2691_s0, 1 }
  0x1c   : > { %534 = sbr.rel (%p531_p9) target bundleno = 3003 (0xbbb), region = 84  ;;  %s3143_s29 = sld [smem:[#allocation12_spill]] (!%p531_p9) }
  0x1d   : > { %s3144_s3 = sld [smem:[#allocation15_spill]] (!%p531_p9)  ;;  %s2565_s20 = smov (!%p531_p9), 112  }
  0x1e   : > { %s3145_s22 = sld [smem:[#allocation13_spill]] (!%p531_p9)  ;;  %s2566_s21 = smov (!%p531_p9), 16  }
  0x1f   : > { %s3146_s4 = sld [smem:[#allocation16_spill]] (!%p531_p9) }
  0x20   : > { %s3147_s5 = sld [smem:[#allocation17_spill]] (!%p531_p9) }
  0x21   : > { %v2410_v0 = vld [vmem:[%s3142_s26 + $0x8] sm:$0xff]   ;;  %v2560_v1 = vmov 0.0   ;;  %v2411_v2 = vld [vmem:[%s3142_s26] sm:$0xff]   ;;  %vm2561_vm0 = vmmov 0   ;;  %vm630_vm1 = vcmask 261120   ;;  %s597_s24 = scalar_select %p596_p10, %s2691_s0, 1  ;;  %v728_v13 = vlaneseq }
  0x22   : > { %2240 = vmatprep.subr.bf16.mxu0 %v2560_v1  ;;  %2248 = vmatprep.subr.bf16.mxu1 %v2560_v1  ;;  %vm734_vm2 = vcmask 64512   ;;  %vm752_vm3 = vcmask 1043456   ;;  %s3148_s7 = sld [smem:[#allocation19_spill]]  ;;  %vm1313_vm4 = vcmask 130048  }
  0x23   : > { %2241 = vmatpush3.bf16.msra.mxu0 %v2410_v0  ;;  %2244 = vmatprep.mubr.msk.bf16.mxu0 %vm2561_vm0, %v2560_v1  ;;  %s2138_s25 = sshll.u32 %s597_s24, 2  ;;  %v2139_v4 = vld [vmem:[%s3144_s3] ss:$0 sm:$0xff]  ;;  %v2761_v16 = vshrl.u32 %v728_v13, 7  ;;  %s3149_s6 = sld [smem:[#allocation18_spill]] }
  0x24   : > { %2242 = vmatprep.subr.bf16.mxu0 %v2560_v1  ;;  %2250 = vmatprep.mubr.msk.bf16.mxu1 %vm2561_vm0, %v2560_v1  ;;  %s599_s1 = scalar_lea.vmem %s3143_s29, %s2138_s25  ;;  %s3120_s29 = smov 96  }
  0x25   : > { %v2739_v3 = vld [vmem:[%s599_s1] sm:$0xf]  ;;  %s602_s25 = scalar_lea.vmem %s3145_s22, %s597_s24  ;;  %v2764_v18 = vsub.s32 0, %v2761_v16  ;;  %s3122_s24 = smov 64   ;;  %v2412_v32 = vld [vmem:[%s3146_s4 + $0x8] sm:$0xff]  }
  0x26   : > { %v2757_v14 = vld [vmem:[%s602_s25] sm:$0x1]  ;;  %v605_v46 = vunpack.c.l.bf16 %v2739_v3  ;;  %s3150_s8 = sld [smem:[#allocation20_spill]]  ;;  %s3152_s22 = smov 96  }
  0x27   : > { %2243 = vmatpush3.bf16.msra.mxu0 %v2411_v2  ;;  %v725_v15 = vsub.f32 1.0, %v2757_v14  ;;  %v2413_v39 = vld [vmem:[%s3146_s4] sm:$0xff]   ;;  %v2802_v2 = vsub.s32 1, %v2761_v16  ;;  %s2567_s25 = smov 80  }
  0x28   : > { %2254 = vmatprep.subr.bf16.mxu0 %v2560_v1  ;;  %v2145_v45 = vld [vmem:[%s3147_s5] ss:$0 sm:$0xff]  ;;  %v2414_v59 = vld [vmem:[%s3148_s7 + $0x8] sm:$0xff]  }
  0x29   : > { %v726_v17 = vmul.f32 -1e+09, %v725_v15  ;;  %v2415_v60 = vld [vmem:[%s3148_s7] sm:$0xff]  }
  0x2a   : > { %2245 = vmatmul.mubr.msk.bf16.vlgmr.msra.gmra.mxu0 %vm630_vm1, %v2739_v3  ;;  %v864_v0 = vld [vmem:[%s3149_s6] sm:$0x3] }
  0x2b   : > { %2256 = vmatprep.mubr.msk.bf16.mxu0 %vm2561_vm0, %v2560_v1  ;;  %v731_v19 = vrot.slane %v726_v17, %v2764_v18  ;;  %v882_v3 = vrot.slane %v864_v0, %v2764_v18  ;;  %v2419_v15 = vld [vmem:[%s3105_s9 + $0x20] sm:$0xff]   ;;  %v2420_v17 = vld [vmem:[%s3105_s9 + $0x18] sm:$0xff]  }
  0xea   : > { %v668_v5 = vpop.f32.mrf.mxu0 }
  0xeb   : > { %v669_v6 = vadd.f32 %v2139_v4, %v668_v5 }
  0xec   : > { %v2246_v7 = vpop.f32.mrf.mxu0 }
  0xed   : > { %v674_v8 = vpack.c.bf16 %v669_v6, %v669_v6  ;;  %v887_v6 = vrot.slane %v864_v0, %v2802_v2 }
  0xee   : > { %v671_v9 = vpop.f32.mrf.mxu0 }
  0xef   : > { %676 = vrot.lane.b32.xlu0 %v674_v8, %s3120_s29  ;;  %s3151_s29 = smov 64  }
  0xf0   : > { %v2247_v10 = vpop.f32.mrf.mxu0 }
  0xf1   : > { %v2416_v10 = vld [vmem:[%s3105_s9 + $0x38] sm:$0xff]  }
 0x161   : > { %v677_v11 = vpop.permute.xlu0 %676 }
 0x162   : > { %v682_v12 = vsel %vm630_vm1, %v677_v11, 0  ;;  %v2417_v11 = vld [vmem:[%s3105_s9 + $0x30] sm:$0xff]  }
 0x163   : > { %2249 = vmatpush3.bf16.xpose.msra.mxu1 %v682_v12  ;;  %v2418_v12 = vld [vmem:[%s3105_s9 + $0x28] sm:$0xff]  }
 0x164   : > { %2260 = vmatprep.subr.bf16.mxu1 %v2560_v1 }
 0x16a   : > { %2251 = vmatmul.mubr.msk.bf16.vlgmr.msra.gmra.mxu1 %vm630_vm1, %v674_v8 }
 0x16b   : > { %2264 = vmatprep.mubr.msk.bf16.mxu1 %vm2561_vm0, %v2560_v1  ;;  %2261 = vmatpush3.bf16.msra.mxu1 %v2412_v32 }
 0x16c   : > { %2262 = vmatprep.subr.bf16.mxu1 %v2560_v1 }
 0x16f   : > { %2263 = vmatpush3.bf16.msra.mxu1 %v2413_v39 }
 0x170   : > { %2276 = vmatprep.subr.bf16.mxu1 %v2560_v1 }
 0x22a   : > { %v718_v20 = vpop.f32.mrf.mxu1 }
 0x22b   : > { %v724_v21 = vmul.f32 0.17677669, %v718_v20  ;;  %v2422_v20 = vld [vmem:[%s3105_s9 + $0x8] sm:$0xff]  }
 0x22c   : > { %v2252_v22 = vpop.f32.mrf.mxu1 }
 0x22d   : > { %v733_v23 = vadd.f32 %v731_v19, %v724_v21  ;;  %v2421_v19 = vld [vmem:[%s3105_s9 + $0x10] sm:$0xff]   ;;  %v2423_v21 = vld [vmem:[%s3105_s9] sm:$0xff]  }
 0x22e   : > { %v721_v24 = vpop.f32.mrf.mxu1  ;;  %v2149_v22 = vld [vmem:[%s3150_s8] ss:$0 sm:$0xff] }
 0x22f   : > { %v735_v25 = vsel %vm734_vm2, %v733_v23, -inf }
 0x230   : > { %736 = vmax.xlane.f32.xlu0 %v735_v25  ;;  %v2253_v26 = vpop.f32.mrf.mxu1 }
 0x2b9   : > { %v737_v27 = vpop.xlane.xlu0 %736 }
 0x2ba   : > { %v738_v28 = vsub.f32 %v733_v23, %v737_v27 }
 0x2bc   : > { %v739_v29 = vmul.f32 1.442695, %v738_v28 }
 0x2be   : > { %2432 = vpow2.f32 %v739_v29 }
 0x2cb   : > { %v2433_v30 = vpop.eup %2432 }
 0x2cc   : > { %v741_v31 = vsel %vm734_vm2, %v2433_v30, 0.0 }
 0x2cd   : > { %742 = vadd.xlane.f32.xlu1 %v741_v31 }
 0x2de   : > { %747 = vrot.lane.b32.xlu1 %v674_v8, %s3122_s24  ;;  %s2568_s24 = smov 32  }
 0x356   : > { %v743_v33 = vpop.xlane.xlu1 %742 }
 0x357   : > { %2434 = vrcp.f32 %v743_v33 }
 0x35a   : > { %v748_v34 = vpop.permute.xlu1 %747 }
 0x35b   : > { %v754_v35 = vsel %vm752_vm3, %v748_v34, 0 }
 0x35c   : > { %2255 = vmatpush3.bf16.msra.mxu0 %v754_v35 }
 0x35d   : > { %2268 = vmatprep.subr.bf16.mxu0 %v2560_v1 }
 0x364   : > { %v2435_v36 = vpop.eup %2434 }
 0x365   : > { %v745_v37 = vmul.f32 %v2435_v36, %v2433_v30 }
 0x367   : > { %v746_v38 = vpack.c.bf16 %v745_v37, %v745_v37 }
 0x369   : > { %2257 = vmatmul.mubr.msk.bf16.vlgmr.msra.gmra.mxu0 %vm734_vm2, %v746_v38  ;;  %v2153_v38 = vld [vmem:[%s3106_s10] ss:$0 sm:$0xff] }
 0x36a   : > { %2272 = vmatprep.mubr.msk.bf16.mxu0 %vm2561_vm0, %v2560_v1  ;;  %2269 = vmatpush3.bf16.msra.mxu0 %v2414_v59 }
 0x36b   : > { %2270 = vmatprep.subr.bf16.mxu0 %v2560_v1 }
 0x36e   : > { %2271 = vmatpush3.bf16.msra.mxu0 %v2415_v60  ;;  %v1078_v60 = vld [vmem:[%s3107_s11] sm:$0x3] }
 0x36f   : > { %v1100_v0 = vrot.slane %v1078_v60, %v2802_v2 }
 0x429   : > { %v790_v40 = vpop.f32.mrf.mxu0 }
 0x42a   : > { %v796_v41 = vpack.c.bf16 %v790_v40, %v790_v40 }
 0x42b   : > { %v2258_v42 = vpop.f32.mrf.mxu0 }
 0x42c   : > { %2265 = vmatmul.mubr.msk.bf16.vlgmr.msra.gmra.mxu1 %vm630_vm1, %v796_v41 }
 0x42d   : > { %v793_v43 = vpop.f32.mrf.mxu0  ;;  %2292 = vmatprep.mubr.msk.bf16.mxu1 %vm2561_vm0, %v2560_v1  ;;  %2277 = vmatpush3.bf16.msra.mxu1 %v2416_v10 }
 0x42e   : > { %2278 = vmatprep.subr.bf16.mxu1 %v2560_v1 }
 0x42f   : > { %v2259_v44 = vpop.f32.mrf.mxu0 }
 0x431   : > { %2279 = vmatpush3.bf16.msra.mxu1 %v2417_v11 }
 0x432   : > { %2280 = vmatprep.subr.bf16.mxu1 %v2560_v1 }
 0x435   : > { %2281 = vmatpush3.bf16.msra.mxu1 %v2418_v12 }
 0x436   : > { %2282 = vmatprep.subr.bf16.mxu1 %v2560_v1 }
 0x439   : > { %2283 = vmatpush3.bf16.msra.mxu1 %v2419_v15 }
 0x43a   : > { %2284 = vmatprep.subr.bf16.mxu1 %v2560_v1 }
 0x43d   : > { %2285 = vmatpush3.bf16.msra.mxu1 %v2420_v17 }
 0x43e   : > { %2286 = vmatprep.subr.bf16.mxu1 %v2560_v1 }
 0x441   : > { %2287 = vmatpush3.bf16.msra.mxu1 %v2421_v19 }
 0x442   : > { %2288 = vmatprep.subr.bf16.mxu1 %v2560_v1 }
 0x445   : > { %2289 = vmatpush3.bf16.msra.mxu1 %v2422_v20 }
 0x446   : > { %2290 = vmatprep.subr.bf16.mxu1 %v2560_v1 }
 0x449   : > { %2291 = vmatpush3.bf16.msra.mxu1 %v2423_v21 }
 0x44a   : > { %2319 = vmatprep.subr.mxu1 %v2560_v1 }
 0x4ec   : > { %v857_v47 = vpop.f32.mrf.mxu1 }
 0x4ed   : > { %v858_v48 = vadd.f32 %v2145_v45, %v857_v47 }
 0x4ee   : > { %v2266_v49 = vpop.f32.mrf.mxu1 }
 0x4ef   : > { %v863_v50 = vadd.f32 %v858_v48, %v605_v46 }
 0x4f0   : > { %v860_v51 = vpop.f32.mrf.mxu1 }
 0x4f1   : > { %v865_v52 = vsel %vm630_vm1, %v863_v50, 0.0  ;;  %v2426_v51 = vld [vmem:[%s3108_s12 + $0x1c] ss:$12 sps:$4 sm:$0xff]  }
 0x4f2   : > { %v2267_v53 = vpop.f32.mrf.mxu1  ;;  %866 = vadd.xlane.f32.xlu1 %v865_v52  ;;  %v2424_v52 = vld [vmem:[%s3108_s12 + $0x18] ss:$12 sps:$4 sm:$0xff]   ;;  %1175 = vmatprep.subr.bf16.mxu0 %v2426_v51 }
 0x4f3   : > { %v2429_v53 = vld [vmem:[%s3108_s12 + $0x4] ss:$12 sps:$4 sm:$0xff]  }
 0x57b   : > { %v867_v54 = vpop.xlane.xlu1 %866 }
 0x57c   : > { %v869_v55 = vmul.f32 0.03125, %v867_v54  ;;  %v2427_v54 = vld [vmem:[%s3108_s12] ss:$12 sps:$4 sm:$0xff]  }
 0x57e   : > { %v870_v56 = vsub.f32 %v863_v50, %v869_v55  ;;  %v2564_v55 = vmov 0  }
 0x57f   : > { %2408 = vset.pattern.permute.xlu1 %v2564_v55 }
 0x580   : > { %v871_v57 = vmul.f32 %v870_v56, %v870_v56 }
 0x582   : > { %v872_v58 = vsel %vm630_vm1, %v871_v57, 0.0 }
 0x583   : > { %873 = vadd.xlane.f32.xlu0 %v872_v58 }
 0x60c   : > { %v874_v61 = vpop.xlane.xlu0 %873 }
 0x60d   : > { %v875_v62 = vmul.f32 0.03125, %v874_v61  ;;  %v1095_v61 = vrot.slane %v1078_v60, %v2764_v18 }
 0x60f   : > { %v876_v63 = vadd.f32 1e-12, %v875_v62 }
 0x611   : > { %2436 = vrsqrt.f32 %v876_v63 }
 0x61e   : > { %v2437_v4 = vpop.eup %2436 }
 0x61f   : > { %v878_v5 = vmul.f32 %v2437_v4, %v870_v56  ;;  %v1246_v56 = vld [vmem:[%s3111_s15] sm:$0xff] }
 0x621   : > { %v883_v7 = vmul.f32 %v882_v3, %v878_v5  ;;  %v2430_v5 = vld [vmem:[%s3108_s12 + $0x20] ss:$12 sps:$4 sm:$0xff]  }
 0x623   : > { %v888_v8 = vadd.f32 %v887_v6, %v883_v7  ;;  %v2431_v7 = vld [vmem:[%s3108_s12 + $0x8] ss:$12 sps:$4 sm:$0xff]  }
 0x625   : > { %v889_v9 = vpack.c.bf16 %v888_v8, %v888_v8 }
 0x627   : > { %2273 = vmatmul.mubr.msk.bf16.vlgmr.msra.gmra.mxu0 %vm630_vm1, %v889_v9 }
 0x628   : > { %1176 = vmatpush1.bf16.msra.mxu0 %v2424_v52  ;;  %1195 = vmatprep.mubr.bf16.mxu0 %v2564_v55 }
 0x629   : > { %1177 = vmatprep.subr.bf16.mxu0 %v2429_v53 }
 0x62c   : > { %1178 = vmatpush1.bf16.msra.mxu0 %v2427_v54 }
 0x62d   : > { %2296 = vmatprep.subr.bf16.mxu0 %v2560_v1 }
 0x6e7   : > { %v950_v23 = vpop.f32.mrf.mxu0 }
 0x6e8   : > { %v951_v24 = vadd.f32 %v2149_v22, %v950_v23 }
 0x6e9   : > { %v2274_v25 = vpop.f32.mrf.mxu0 }
 0x6ea   : > { %v956_v26 = vmul.f32 %v951_v24, %v951_v24 }
 0x6eb   : > { %v953_v27 = vpop.f32.mrf.mxu0 }
 0x6ec   : > { %v957_v28 = vmul.f32 %v956_v26, %v951_v24 }
 0x6ed   : > { %v2275_v29 = vpop.f32.mrf.mxu0 }
 0x6ee   : > { %v958_v30 = vmul.f32 0.044715, %v957_v28 }
 0x6f0   : > { %v959_v31 = vadd.f32 %v958_v30, %v951_v24 }
 0x6f2   : > { %v960_v32 = vmul.f32 0.7978846, %v959_v31  ;;  %v1123_v31 = vsub.s32 2, %v2761_v16 }
 0x6f4   : > { %2438 = vtanh.f32 %v960_v32 }
 0x701   : > { %v2439_v33 = vpop.eup %2438 }
 0x702   : > { %v962_v34 = vadd.f32 1.0, %v2439_v33 }
 0x704   : > { %v963_v35 = vmul.f32 0.5, %v962_v34 }
 0x706   : > { %v964_v36 = vmul.f32 %v963_v35, %v951_v24 }
 0x708   : > { %v965_v37 = vpack.c.bf16 %v964_v36, %v964_v36 }
 0x70a   : > { %2293 = vmatmul.mubr.bf16.vlgmr.msra.gmra.mxu1 %v965_v37 }
 0x70b   : > { %2321 = vmatprep.mubr.msk.f32.mxu1 %vm2561_vm0, %v2560_v1 }
 0x7ca   : > { %v1071_v39 = vpop.f32.mrf.mxu1 }
 0x7cb   : > { %v1072_v40 = vadd.f32 %v2153_v38, %v1071_v39 }
 0x7cc   : > { %v2294_v41 = vpop.f32.mrf.mxu1 }
 0x7cd   : > { %v1077_v42 = vadd.f32 %v1072_v40, %v888_v8  ;;  %v1111_v8 = vld [vmem:[%s3109_s13] sm:$0x7] }
 0x7ce   : > { %v1074_v43 = vpop.f32.mrf.mxu1  ;;  %v1116_v9 = vrot.slane %v1111_v8, %v2764_v18  ;;  %v1120_v10 = vrot.slane %v1111_v8, %v2802_v2  ;;  %v1244_v2 = vld [vmem:[%s3110_s14] sm:$0xff]  ;;  %v1124_v32 = vrot.slane %v1111_v8, %v1123_v31 }
 0x7cf   : > { %v1079_v44 = vsel %vm630_vm1, %v1077_v42, 0.0 }
 0x7d0   : > { %1080 = vadd.xlane.f32.xlu0 %v1079_v44  ;;  %v2295_v45 = vpop.f32.mrf.mxu1 }
 0x859   : > { %v1081_v46 = vpop.xlane.xlu0 %1080 }
 0x85a   : > { %v1082_v47 = vmul.f32 0.03125, %v1081_v46 }
 0x85c   : > { %v1083_v48 = vsub.f32 %v1077_v42, %v1082_v47  ;;  %v1298_v47 = vrot.slane %v2757_v14, %v2764_v18 }
 0x85e   : > { %v1084_v49 = vmul.f32 %v1083_v48, %v1083_v48 }
 0x860   : > { %v1085_v50 = vsel %vm630_vm1, %v1084_v49, 0.0 }
 0x861   : > { %1086 = vadd.xlane.f32.xlu0 %v1085_v50 }
 0x877   : > { %1248 = vrot.lane.b32.xlu0 %v1246_v56, %s3151_s29 }
 0x8ea   : > { %v1087_v57 = vpop.xlane.xlu0 %1086 }
 0x8eb   : > { %v1088_v58 = vmul.f32 0.03125, %v1087_v57 }
 0x8ed   : > { %v1089_v59 = vadd.f32 1e-12, %v1088_v58 }
 0x8ee   : > { %v1249_v12 = vpop.permute.xlu0 %1248 }
 0x8ef   : > { %2440 = vrsqrt.f32 %v1089_v59 }
 0x8fc   : > { %v2441_v62 = vpop.eup %2440 }
 0x8fd   : > { %v1091_v63 = vmul.f32 %v2441_v62, %v1083_v48  ;;  %v1306_v48 = vand.u32 127, %v728_v13 }
 0x8ff   : > { %v1096_v3 = vmul.f32 %v1095_v61, %v1091_v63  ;;  %vm1307_vm5 = vcmp.gt.s32.totalorder %v2761_v16, %v1306_v48 }
 0x900   : > { %v1308_v53 = vsel %vm1307_vm5, -1e+12, %v2560_v1 }
 0x901   : > { %v1101_v4 = vadd.f32 %v1100_v0, %v1096_v3 }
 0x903   : > { %v1102_v6 = vpack.c.bf16 %v1101_v4, %v1101_v4 }
 0x905   : > { %2168 = vmatmul.mubr.msk.bf16.vlgmr.msra.gmra.mxu0 %vm630_vm1, %v1102_v6 }
 0x906   : > { %2297 = vmatpush3.bf16.msra.mxu0 %v2430_v5  ;;  %2300 = vmatprep.mubr.msk.bf16.mxu0 %vm2561_vm0, %v2560_v1 }
 0x907   : > { %2298 = vmatprep.subr.bf16.mxu0 %v2560_v1 }
 0x90a   : > { %2299 = vmatpush3.bf16.msra.mxu0 %v2431_v7 }
 0x90b   : > { %2304 = vmatprep.subr.mxu0 %v2560_v1 }
 0x90d   : > { %2301 = vmatmul.mubr.msk.bf16.vlgmr.msra.gmra.mxu0 %vm630_vm1, %v1102_v6 }
 0x90e   : > { %2306 = vmatprep.mubr.msk.f32.mxu0 %vm2561_vm0, %v2560_v1 }
 0x9c5   : > { %v1197_v11 = vpop.f32.mrf.mxu0 }
 0x9c6   : > { %v1198_v15 = vadd.f32 %v1197_v11, %v1116_v9 }
 0x9c7   : > { %v1199_v17 = vpop.f32.mrf.mxu0 }
 0x9c8   : > { %v1251_v19 = vmul.f32 %v1249_v12, %v1198_v15  ;;  %v1200_v20 = vadd.f32 %v1199_v17, %v1120_v10  ;;  %v1245_v27 = vmul.f32 %v1244_v2, %v1198_v15 }
 0x9c9   : > { %v1201_v21 = vpop.f32.mrf.mxu0 }
 0x9ca   : > { %1470 = vrot.lane.b32.xlu0 %v1200_v20, %s2565_s20  ;;  %1253 = vrot.lane.b32.xlu1 %v1251_v19, %s3151_s29 }
 0x9cb   : > { %v1202_v22 = vpop.f32.mrf.mxu0 }
 0x9cd   : > { %v1238_v23 = vpop.f32.mrf.mxu0 }
 0x9ce   : > { %1549 = vrot.lane.b32.xlu1 %v1200_v20, %s2566_s21  ;;  %v1239_v33 = vadd.f32 %v1238_v23, %v1124_v32  ;;  %s2569_s21 = smov 48  }
 0x9cf   : > { %v2302_v24 = vpop.f32.mrf.mxu0 }
 0x9d1   : > { %v1241_v25 = vpop.f32.mrf.mxu0 }
 0x9d3   : > { %v2303_v26 = vpop.f32.mrf.mxu0 }
 0xa3c   : > { %v1254_v28 = vpop.permute.xlu1 %1253  ;;  %v1471_v34 = vpop.permute.xlu0 %1470 }
 0xa3d   : > { %v1256_v29 = vadd.f32 %v1254_v28, %v1245_v27 }
 0xa3f   : > { %1389 = vrot.lane.b32.xlu1 %v1256_v29, %s3152_s22  ;;  %1311 = vrot.lane.b32.xlu0 %v1256_v29, %s2565_s20 }
 0xa40   : > { %v1550_v30 = vpop.permute.xlu1 %1549 }
 0xa41   : > { %2320 = vmatpush3.xpose.msk.msra.mxu1 %vm1313_vm4, %v1550_v30 }
 0xa42   : > { %2329 = vmatprep.subr.mxu1 %v2560_v1 }
 0xa43   : > { %1628 = vrot.lane.b32.xlu1 %v1200_v20, %s2567_s25  ;;  %1391 = vrot.lane.b32.xlu0 %v1256_v29, %s2567_s25 }
 0xa47   : > { %1626 = vrot.lane.b32.xlu1 %v1200_v20, %s3152_s22  ;;  %1547 = vrot.lane.b32.xlu0 %v1200_v20, %s2568_s24 }
 0xa4b   : > { %1867 = vrot.lane.b32.xlu1 %v1239_v33, %s2567_s25  ;;  %1707 = vrot.lane.b32.xlu0 %v1239_v33, %s2565_s20  ;;  %s2198_s25 = sshll.u32 %s2691_s0, 8 }
 0xa4c   : > { %s2960_s19 = scalar_lea.hbm %s3112_s16, %s2198_s25  ;;  %s2570_s25 = smov [#allocation2]  }
 0xa4d   : > { %s2446_s24 = sshll.u32 %s2570_s25, 4  ;;  %s2447_s24 = int_to_ptr.vmem [resolvable:$false] %s2446_s24 }
 0xa4f   : > { %1865 = vrot.lane.b32.xlu1 %v1239_v33, %s3152_s22  ;;  %1787 = vrot.lane.b32.xlu0 %v1200_v20, %s2569_s21  ;;  %s2448_s21 = scalar_lea.vmem %s2447_s24, 512 }
 0xa53   : > { %1785 = vrot.lane.b32.xlu0 %v1200_v20, %s3151_s29  ;;  %s2947_s29 = sand.u32 1, %s2550_s28  }
 0xa54   : > { %s2137_s20 = sshll.u32 %s2947_s29, 4 }
 0xa55   : > { %s581_s1 = scalar_lea.vmem [#allocation2], %s2137_s20  ;;  %s3153_s20 = smul.u32 24, %s2947_s29 }
 0xa56   : > { %s1969_s22 = sshll.u32 %s581_s1, 4  ;;  %s2955_s22 = int_to_ptr.vmem [resolvable:$true] %s1969_s22 }
 0xa57   : > { %s2966_s3 = scalar_lea.vmem [#allocation6], %s3153_s20  ;;  %s2442_s5 = scalar_lea.vmem %s2955_s22, 256 }
 0xa58   : > { %p2443_p11 = scmp.ne.s32.totalorder %s2955_s22, %s2442_s5  ;;  %p2449_p0 = scmp.lt.s32.totalorder %s2955_s22, %s2447_s24 }
 0xa59   : > { %p2450_p1 = scmp.lt.s32.totalorder %s2448_s21, %s2442_s5 }
 0xa5a   : > { %p2444_p12 = pnand %p2443_p11, %p2710_p5 }
 0xa5b   : > { %p2451_p2 = por %p2450_p1, %p2449_p0 }
 0xa5c   : > { %p2445_p13 = pneg %p2444_p12 }
 0xa5e   : > { %p2452_p3 = pnand %p2451_p2, %p2445_p13 }
 0xa71   : > { %1257 = vxpose.xlu0.b32.start.end [1/1] (short) (narrow) %v2757_v14, 8 }
 0xa9a   : > { %2409 = vset.pattern.permute.xlu0 %v2564_v55 }
 0xab1   : > { %v1390_v35 = vpop.permute.xlu1 %1389  ;;  %v1312_v36 = vpop.permute.xlu0 %1311 }
 0xab2   : > { %2305 = vmatpush3.xpose.msk.msra.mxu0 %vm1313_vm4, %v1312_v36 }
 0xab3   : > { %2309 = vmatprep.subr.mxu0 %v2560_v1 }
 0xab5   : > { %v1629_v37 = vpop.permute.xlu1 %1628  ;;  %2307 = vmatmul.mubr.msk.f32.vlgmr.msra.gmra.mxu0 %vm1313_vm4, %v1256_v29  ;;  %v1392_v38 = vpop.permute.xlu0 %1391 }
 0xab6   : > { %2310 = vmatpush3.xpose.msk.msra.mxu0 %vm1313_vm4, %v1392_v38  ;;  %2311 = vmatprep.mubr.msk.f32.mxu0 %vm2561_vm0, %v2560_v1 }
 0xab7   : > { %2314 = vmatprep.subr.mxu0 %v2560_v1 }
 0xab9   : > { %v1627_v39 = vpop.permute.xlu1 %1626  ;;  %2312 = vmatmul.mubr.msk.f32.vlgmr.msra.gmra.mxu0 %vm1313_vm4, %v1390_v35  ;;  %v1548_v40 = vpop.permute.xlu0 %1547 }
 0xaba   : > { %2315 = vmatpush3.xpose.msk.msra.mxu0 %vm1313_vm4, %v1471_v34  ;;  %2322 = vmatmul.mubr.msk.f32.vlgmr.msra.gmra.mxu1 %vm1313_vm4, %v1548_v40 }
 0xabb   : > { %2316 = vmatprep.mubr.msk.f32.mxu0 %vm2561_vm0, %v2560_v1  ;;  %2324 = vmatprep.subr.mxu0 %v2560_v1 }
 0xabc   : > { %2331 = vmatprep.mubr.msk.f32.mxu1 %vm2561_vm0, %v2560_v1 }
 0xabd   : > { %2317 = vmatmul.mubr.msk.f32.vlgmr.msra.gmra.mxu0 %vm1313_vm4, %v1200_v20  ;;  %v1708_v41 = vpop.permute.xlu0 %1707  ;;  %v1868_v42 = vpop.permute.xlu1 %1867 }
 0xabe   : > { %2325 = vmatpush3.xpose.msk.msra.mxu0 %vm1313_vm4, %v1629_v37  ;;  %2330 = vmatpush3.xpose.msk.msra.mxu1 %vm1313_vm4, %v1708_v41 }
 0xabf   : > { %2326 = vmatprep.mubr.msk.f32.mxu0 %vm2561_vm0, %v2560_v1  ;;  %2334 = vmatprep.subr.mxu0 %v2560_v1 }
 0xac0   : > { %2339 = vmatprep.subr.mxu1 %v2560_v1 }
 0xac1   : > { %2327 = vmatmul.mubr.msk.f32.vlgmr.msra.gmra.mxu0 %vm1313_vm4, %v1627_v39  ;;  %2332 = vmatmul.mubr.msk.f32.vlgmr.msra.gmra.mxu1 %vm1313_vm4, %v1239_v33  ;;  %v1788_v43 = vpop.permute.xlu0 %1787  ;;  %v1866_v44 = vpop.permute.xlu1 %1865 }
 0xac2   : > { %2335 = vmatpush3.xpose.msk.msra.mxu0 %vm1313_vm4, %v1788_v43  ;;  %2340 = vmatpush3.xpose.msk.msra.mxu1 %vm1313_vm4, %v1868_v42 }
 0xac3   : > { %2341 = vmatprep.mubr.msk.f32.mxu1 %vm2561_vm0, %v2560_v1  ;;  %2336 = vmatprep.mubr.msk.f32.mxu0 %vm2561_vm0, %v2560_v1 }
 0xac5   : > { %2342 = vmatmul.mubr.msk.f32.vlgmr.msra.gmra.mxu1 %vm1313_vm4, %v1866_v44  ;;  %v1786_v45 = vpop.permute.xlu0 %1785 }
 0xac6   : > { %2337 = vmatmul.mubr.msk.f32.vlgmr.msra.gmra.mxu0 %vm1313_vm4, %v1786_v45 }
 0xaed   : > { %v1273_v46 = vpop.trf.xlu0 }
 0xaee   : > { %1291 = vperm.xlu1 %2408, %v1273_v46  }
 0xb69   : > { %v1292_v49 = vpop.permute.xlu1 %1291 }
 0xb6a   : > { %v1300_v50 = vmul.f32 %v1298_v47, %v1292_v49 }
 0xb6c   : > { %v1301_v51 = vsub.f32 1.0, %v1300_v50 }
 0xb6e   : > { %v2944_v52 = vmul.f32 -1e+12, %v1301_v51 }
 0xb70   : > { %v1309_v54 = vadd.f32 %v1308_v53, %v2944_v52 }
 0xb75   : > { %v1384_v14 = vpop.f32.mrf.mxu0 }
 0xb76   : > { %v1385_v13 = vadd.f32 %v1384_v14, %v1309_v54 }
 0xb77   : > { %v2308_v18 = vpop.f32.mrf.mxu0 }
 0xb78   : > { %1388 = vst.msk [vmem:[%s581_s1] sm:$0xff] %vm734_vm2, %v1385_v13 }
 0xb79   : > { %v1463_v1 = vpop.f32.mrf.mxu0 }
 0xb7a   : > { %v1464_v16 = vadd.f32 %v1463_v1, %v1309_v54  ;;  %v1621_v55 = vpop.f32.mrf.mxu1 }
 0xb7b   : > { %v1622_v56 = vadd.f32 %v1621_v55, %v2944_v52  ;;  %v2313_v57 = vpop.f32.mrf.mxu0 }
 0xb7c   : > { %2174 = vst.msk [vmem:[%s581_s1 + $0x8] sm:$0xff] %vm734_vm2, %v1464_v16  ;;  %v2323_v58 = vpop.f32.mrf.mxu1 }
 0xb7d   : > { %1625 = vst.msk [vmem:[%s2966_s3] sm:$0xff] %vm734_vm2, %v1622_v56  ;;  %v1542_v59 = vpop.f32.mrf.mxu0 }
 0xb7e   : > { %2455 = shalt.err (!%p2452_p3)
}
 0xb7f   : > { %s2456_s1 = scalar_lea.hbm %s2960_s19, 256  ;;  %s2460_s25 = scalar_lea.hbm %s3112_s16, 512 }
 0xb80   : > { %p2457_p4 = scmp.ne.s32.totalorder %s2960_s19, %s2456_s1  ;;  %p2461_p9 = scmp.lt.s32.totalorder %s2960_s19, %s3112_s16 }
 0xb81   : > { %p2462_p10 = scmp.lt.s32.totalorder %s2460_s25, %s2456_s1 }
 0xb82   : > { %p2458_p7 = pnand %p2457_p4, %p2710_p5 }
 0xb83   : > { %p2463_p11 = por %p2462_p10, %p2461_p9 }
 0xb84   : > { %p2459_p8 = pneg %p2458_p7 }
 0xb86   : > { %p2464_p12 = pnand %p2463_p11, %p2459_p8 }
 0xb88   : > { %2467 = shalt.err (!%p2464_p12)
}
 0xb89   : > { %s3124_s5 = smov 128   ;;  %s3126_s24 = smov 8   ;;  %v1543_v60 = vadd.f32 %v1542_v59, %v2944_v52  ;;  %v2318_v61 = vpop.f32.mrf.mxu0  ;;  %v1779_v63 = vpop.f32.mrf.mxu1 }
 0xb8a   : > { %s3154_s4 = scalar_lea.sflag [#allocation3], %s2947_s29  ;;  %s3155_s6 = smul.u32 24, %s2947_s29  ;;  %v1780_v3 = vadd.f32 %v1779_v63, %v2944_v52 }
 0xb8b   : > { %2347 = dma.vmem_to_hbm [thread:$0]  (%p2710_p5), %s2955_s22, 256, %s2960_s19, %s3154_s4, %s3124_s5, %s3124_s5, %s3126_s24   ;;  %v1700_v62 = vpop.f32.mrf.mxu0  ;;  %v2333_v5 = vpop.f32.mrf.mxu1 }
 0xb8c   : > { %s588_s7 = scalar_lea.vmem [#allocation4], %s3155_s6  ;;  %v1701_v0 = vadd.f32 %v1700_v62, %v2944_v52  ;;  %s2345_s1 = smul.u32 384, %s2691_s0  ;;  %2184 = vst.msk [vmem:[%s2966_s3 + $0x8] sm:$0xff] %vm734_vm2, %v1780_v3 }
 0xb8d   : > { %1546 = vst.msk [vmem:[%s588_s7] sm:$0xff] %vm734_vm2, %v1543_v60  ;;  %s1985_s21 = sshll.u32 %s588_s7, 4  ;;  %v2328_v4 = vpop.f32.mrf.mxu0  ;;  %s1950_s19 = sand.u32 1, %s2691_s0   ;;  %v1939_v6 = vpop.f32.mrf.mxu1  ;;  %s3008_s21 = int_to_ptr.vmem [resolvable:$true] %s1985_s21 }
 0xb8e   : > { %2181 = vst.msk [vmem:[%s588_s7 + $0x8] sm:$0xff] %vm734_vm2, %v1701_v0  ;;  %s2001_s29 = sshll.u32 %s2966_s3, 4  ;;  %v1940_v7 = vadd.f32 %v1939_v6, %v2944_v52  ;;  %s3015_s25 = scalar_lea.hbm %s3113_s17, %s2345_s1  ;;  %s3017_s29 = int_to_ptr.vmem [resolvable:$true] %s2001_s29 }
 0xb8f   : > { %v1859_v8 = vpop.f32.mrf.mxu0  ;;  %v2343_v10 = vpop.f32.mrf.mxu1  ;;  %s3024_s6 = scalar_lea.hbm %s3114_s18, %s2345_s1  ;;  %s3027_s5 = scalar_lea.sflag [#allocation5], %s1950_s19 }
 0xb90   : > { %v1860_v9 = vadd.f32 %v1859_v8, %v2944_v52  ;;  %2190 = vst.msk [vmem:[%s2966_s3 + $0x10] sm:$0xff] %vm734_vm2, %v1940_v7  ;;  %s2468_s24 = scalar_lea.vmem %s3008_s21, 384  ;;  %s2573_s22 = smov [#allocation4]  }
 0xb91   : > { %v2338_v11 = vpop.f32.mrf.mxu0  ;;  %p2469_p13 = scmp.ne.s32.totalorder %s3008_s21, %s2468_s24  ;;  %s2472_s20 = sshll.u32 %s2573_s22, 4  ;;  %s2473_s20 = int_to_ptr.vmem [resolvable:$false] %s2472_s20 }
 0xb92   : > { %2187 = vst.msk [vmem:[%s588_s7 + $0x10] sm:$0xff] %vm734_vm2, %v1860_v9  ;;  %s2474_s8 = scalar_lea.vmem %s2473_s20, 768  ;;  %p2475_p2 = scmp.lt.s32.totalorder %s3008_s21, %s2473_s20 }
 0xb93   : > { %p2470_p0 = pnand %p2469_p13, %p2710_p5  ;;  %p2476_p3 = scmp.lt.s32.totalorder %s2474_s8, %s2468_s24 }
 0xb95   : > { %p2471_p1 = pneg %p2470_p0  ;;  %p2477_p4 = por %p2476_p3, %p2475_p2 }
 0xb97   : > { %p2478_p7 = pnand %p2477_p4, %p2471_p1 }
 0xb99   : > { %2481 = shalt.err (!%p2478_p7)
}
 0xb9a   : > { %s2482_s3 = scalar_lea.hbm %s3015_s25, 384  ;;  %s2486_s19 = scalar_lea.hbm %s3113_s17, 768 }
 0xb9b   : > { %p2483_p8 = scmp.ne.s32.totalorder %s3015_s25, %s2482_s3  ;;  %p2487_p11 = scmp.lt.s32.totalorder %s3015_s25, %s3113_s17 }
 0xb9c   : > { %p2488_p12 = scmp.lt.s32.totalorder %s2486_s19, %s2482_s3 }
 0xb9d   : > { %p2484_p9 = pnand %p2483_p8, %p2710_p5 }
 0xb9e   : > { %p2489_p13 = por %p2488_p12, %p2487_p11 }
 0xb9f   : > { %p2485_p10 = pneg %p2484_p9 }
 0xba1   : > { %p2490_p0 = pnand %p2489_p13, %p2485_p10 }
 0xba3   : > { %2493 = shalt.err (!%p2490_p0)
}
 0xba4   : > { %s3156_s8 = smov 8   ;;  %s3157_s24 = smov 128  }
 0xba5   : > { %2348 = dma.vmem_to_hbm [thread:$0]  (%p2710_p5), %s3008_s21, 384, %s3015_s25, %s3027_s5, %s3157_s24, %s3157_s24, %s3156_s8  }
 0xba6   : > { %s2494_s22 = scalar_lea.vmem %s3017_s29, 384  ;;  %s2574_s20 = smov [#allocation6]  }
 0xba7   : > { %p2495_p1 = scmp.ne.s32.totalorder %s3017_s29, %s2494_s22  ;;  %s2498_s3 = sshll.u32 %s2574_s20, 4  ;;  %s2499_s3 = int_to_ptr.vmem [resolvable:$false] %s2498_s3 }
 0xba8   : > { %s2500_s7 = scalar_lea.vmem %s2499_s3, 768  ;;  %p2501_p4 = scmp.lt.s32.totalorder %s3017_s29, %s2499_s3 }
 0xba9   : > { %p2496_p2 = pnand %p2495_p1, %p2710_p5  ;;  %p2502_p7 = scmp.lt.s32.totalorder %s2500_s7, %s2494_s22 }
 0xbab   : > { %p2497_p3 = pneg %p2496_p2  ;;  %p2503_p8 = por %p2502_p7, %p2501_p4 }
 0xbad   : > { %p2504_p9 = pnand %p2503_p8, %p2497_p3 }
 0xbaf   : > { %2507 = shalt.err (!%p2504_p9)
}
 0xbb0   : > { %s2508_s1 = scalar_lea.hbm %s3024_s6, 384  ;;  %s2512_s19 = scalar_lea.hbm %s3114_s18, 768 }
 0xbb1   : > { %p2509_p10 = scmp.ne.s32.totalorder %s3024_s6, %s2508_s1  ;;  %p2513_p13 = scmp.lt.s32.totalorder %s3024_s6, %s3114_s18 }
 0xbb2   : > { %p2514_p0 = scmp.lt.s32.totalorder %s2512_s19, %s2508_s1 }
 0xbb3   : > { %p2510_p11 = pnand %p2509_p10, %p2710_p5 }
 0xbb4   : > { %p2515_p1 = por %p2514_p0, %p2513_p13 }
 0xbb5   : > { %p2511_p12 = pneg %p2510_p11 }
 0xbb7   : > { %p2516_p2 = pnand %p2515_p1, %p2511_p12 }
 0xbb9   : > { %2519 = shalt.err (!%p2516_p2)
}
 0xbba   : > { %2349 = dma.vmem_to_hbm [thread:$0]  (%p2710_p5), %s3017_s29, 384, %s3024_s6, %s3027_s5, %s3157_s24, %s3157_s24, %s3156_s8  }
 0xbbb PF: > { %p2363_p3 = scmp.ge.s32.totalorder %s2558_s30, 2  ;;  %s2016_s22 = sand.u32 1, %s2546_s27  }
 0xbbc   : > { %s2017_s20 = scalar_lea.sflag [#allocation3], %s2016_s22 }
 0xbbd   : > { %p2354_p4 = pnand %p2363_p3, %p2714_p6 }
 0xbbf   : > { %p2355_p7 = pneg %p2354_p4 }
 0xbc1   : > { %2537 = dma.done.wait (%p2355_p7), %s2017_s20, 256  }
 0xbc2   : > { %2539 = vsyncadd (%p2355_p7), %s2017_s20, 4294967040  ;;  %s3158_s2 = sadd.s32 4294967294, %s2558_s30  }
 0xbc3   : > { %s2025_s3 = sand.u32 1, %s3158_s2  }
 0xbc4   : > { %s2026_s7 = scalar_lea.sflag [#allocation5], %s2025_s3 }
 0xbc5   : > { %2541 = dma.done.wait (%p2355_p7), %s2026_s7, 768  }
 0xbc6   : > { %2543 = vsyncadd (%p2355_p7), %s2026_s7, 4294966528  ;;  %s3159_s30 = sld [smem:[#allocation10_spill]]  ;;  %s3162_s27 = smov %s2550_s28 }
 0xbc7   : > { %s3160_s5 = sld [smem:[#allocation9_spill]] }
 0xbc8   : > { %s3161_s29 = sld [smem:[#allocation11_spill]] }
 0xbcc   : > { %p32_p5 = scmp.ge.s32.totalorder %s3159_s30, 4  }
 0xbcd   : > { %s3163_s28 = smov %s3160_s5 }
 0xbce   :  { %34 = sbr.rel (!%p32_p5) target bundleno = 15 (0xf), region = 159 }
 0xbd3   :  { %2040 = vsyncpa [#allocation3], 1 }
 0xbd4   :  { %2042 = vsyncpa [#allocation3 + $0x1], 1 }
 0xbd5   :  { %2043 = vsyncpa [#allocation5], 1 }
 0xbd6   :  { %2045 = vsyncpa [#allocation5 + $0x1], 1 }

</bundles_post_ra>
